<compile_context>
chip_gen: v7x
topology: tpu7x:2x2x1
jax: 0.10.0
libtpu: 0.0.40
codegen_flags: <defaults>
</compile_context>

<pallas_src>
import functools
import math

import jax
import jax.numpy as jnp
from jax.experimental import pallas as pl
from jax.experimental.pallas import tpu as pltpu


def _round_up(x, m):
    return ((x + m - 1) // m) * m


def _mlp_kernel(x_ref, *refs, num_layer, sigmoid, out_dim):
    """Fused MLP forward on one (TB, in_dim) batch tile.

    refs = (w0, b0, w1, b1, ..., w{L-1}, b{L-1}, o_ref).
    Matmuls hit the MXU with f32 accumulation (weights may be bf16);
    ReLU / sigmoid / softmax run on the VPU/EUP. The output block is exactly
    (TB, out_dim): no padded lanes, no inflated HBM writeback.
    """
    o_ref = refs[-1]
    p_refs = refs[:-1]

    h = x_ref[...]
    for layer in range(num_layer):
        w = p_refs[2 * layer][...]
        b = p_refs[2 * layer + 1][...]  # bias kept in f32
        h = jnp.dot(h.astype(w.dtype), w, preferred_element_type=jnp.float32) + b
        if layer < num_layer - 1:
            h = jnp.maximum(h, 0.0)  # ReLU

    if sigmoid:
        if out_dim == 1:
            h = jax.nn.sigmoid(h)
        else:
            # Exact softmax over the true out_dim lanes (rows sum to 1).
            m = jnp.max(h, axis=-1, keepdims=True)
            e = jnp.exp(h - m)
            h = e / jnp.sum(e, axis=-1, keepdims=True)

    o_ref[...] = h.astype(o_ref.dtype)


def _pad_params(params, *, lane=128, param_dtype=jnp.float32):
    """Zero-pad interior (hidden) widths to a lane-dense multiple of 128.

    The first layer's fan_in (= in_dim of x) and the last layer's fan_out
    (= out_dim of the output) keep their true sizes. Weights are stored in
    `param_dtype` (f32 or bf16); biases stay f32.
    """
    num_layer = len(params)
    flat = []
    for i, (w, b) in enumerate(params):
        fan_in, fan_out = w.shape
        in_pad = fan_in if i == 0 else _round_up(fan_in, lane)
        out_pad = fan_out if i == num_layer - 1 else _round_up(fan_out, lane)
        w = jnp.pad(w, ((0, in_pad - fan_in), (0, out_pad - fan_out)))
        b = jnp.pad(b.reshape(1, -1), ((0, 0), (0, out_pad - fan_out)))
        flat.append(w.astype(param_dtype))
        flat.append(b.astype(jnp.float32))
    return flat


def _choose_tb(batch, in_dim, out_dim, max_width, param_bytes, tb_req,
               vmem_budget=40 * 1024 * 1024):
    """Pick the largest 128-multiple batch tile that fits the VMEM budget
    (single-buffered weights + double-buffered x/out tiles + ~2 live
    activation slabs) and leaves >= 2 grid steps so the 'parallel' batch
    axis shards across both v7x TensorCores."""
    tb = max(128, (int(tb_req) // 128) * 128)

    def tile_bytes(t):
        return 4 * (2 * t * in_dim + 2 * t * out_dim + 2 * t * max_width)

    while tb > 128 and param_bytes + tile_bytes(tb) > vmem_budget:
        tb -= 128
    while tb > 128 and pl.cdiv(batch, tb) < 2:
        tb -= 128
    return tb


def net_forward(x, params, *, sigmoid=False, tb=512, param_dtype=jnp.float32):
    """params: list of (W_t, b) with W_t of shape (fan_in, fan_out), b of (1, fan_out)."""
    num_layer = len(params)
    in_dim = params[0][0].shape[0]
    out_dim = params[-1][0].shape[1]
    B = x.shape[0]

    flat = _pad_params(params, param_dtype=param_dtype)
    max_width = max(max(int(w.shape[1]) for w in flat[0::2]), in_dim)
    param_bytes = sum(int(p.size) * p.dtype.itemsize for p in flat)

    tb = _choose_tb(B, in_dim, out_dim, max_width, param_bytes, tb)

    b_pad = _round_up(B, tb)
    if b_pad != B:
        x = jnp.pad(x, ((0, b_pad - B), (0, 0)))
    grid = (b_pad // tb,)

    kernel = functools.partial(
        _mlp_kernel, num_layer=num_layer, sigmoid=sigmoid, out_dim=out_dim
    )

    tile_bytes = 4 * (2 * tb * in_dim + 2 * tb * out_dim + 2 * tb * max_width)
    vmem_limit = int(min(max(2 * (param_bytes + tile_bytes), 32 * 1024 * 1024),
                         48 * 1024 * 1024))

    flops = 2 * b_pad * sum(int(w.shape[0]) * int(w.shape[1]) for w in flat[0::2])
    bytes_accessed = int(x.size) * 4 + param_bytes + b_pad * out_dim * 4
    transcendentals = b_pad * out_dim if sigmoid else 0

    x_spec = pl.BlockSpec((tb, in_dim), lambda i: (i, 0))
    out_spec = pl.BlockSpec((tb, out_dim), lambda i: (i, 0))
    out_shape = jax.ShapeDtypeStruct((b_pad, out_dim), jnp.float32)
    cparams = pltpu.CompilerParams(
        dimension_semantics=("parallel",), vmem_limit_bytes=vmem_limit
    )
    cost = pl.CostEstimate(
        flops=flops, transcendentals=transcendentals, bytes_accessed=bytes_accessed
    )

    def run(single_buffer_weights):
        if single_buffer_weights:
            # Weight/bias block indices never change across the batch grid:
            # one VMEM buffer suffices (halves resident-parameter VMEM vs the
            # default double buffering; matters most on v7x's 64 MiB VMEM).
            pspecs = [
                pl.BlockSpec(p.shape, lambda i: (0, 0), pipeline_mode=pl.Buffered(1))
                for p in flat
            ]
        else:
            pspecs = [pl.BlockSpec(p.shape, lambda i: (0, 0)) for p in flat]
        return pl.pallas_call(
            kernel,
            out_shape=out_shape,
            grid=grid,
            in_specs=[x_spec] + pspecs,
            out_specs=out_spec,
            compiler_params=cparams,
            cost_estimate=cost,
        )(x, *flat)

    try:
        out = run(True)
    except Exception:
        # Fallback if this JAX build rejects single-buffered pipeline_mode.
        out = run(False)

    # Only a row slice (when the batch was padded); no lane slice needed since
    # the output is written at its true width.
    return out if b_pad == B else out[:B]


def init_net_params(key, in_dim, hidden_dim, out_dim, num_layer):
    """Deterministic init matching torch.nn.Linear default (U(-1/sqrt(fan_in), +))."""
    dims = [in_dim] + [hidden_dim] * (num_layer - 1) + [out_dim]
    params = []
    for i in range(num_layer):
        fan_in, fan_out = dims[i], dims[i + 1]
        key, kw, kb = jax.random.split(key, 3)
        bound = 1.0 / math.sqrt(fan_in)
        w = jax.random.uniform(kw, (fan_in, fan_out), jnp.float32, -bound, bound)
        b = jax.random.uniform(kb, (1, fan_out), jnp.float32, -bound, bound)
        params.append((w, b))
    return params


def net_forward_ref(x, params, *, sigmoid=False):
    """Pure-JAX reference for correctness checking."""
    h = x
    for i, (w, b) in enumerate(params):
        h = h @ w + b
        if i < len(params) - 1:
            h = jnp.maximum(h, 0.0)
    if sigmoid:
        if params[-1][0].shape[1] == 1:
            h = jax.nn.sigmoid(h)
        else:
            h = jax.nn.softmax(h, axis=1)
    return h


if __name__ == "__main__":
    # Small, MLP-consistent shapes. B not a multiple of 128 so the padding
    # path and a multi-step (>=2) batch grid are both exercised.
    B, IN_DIM, HIDDEN, OUT_DIM, NUM_LAYER = 300, 4, 32, 2, 3

    key = jax.random.PRNGKey(0)
    key, kx = jax.random.split(key)
    x = jax.random.normal(kx, (B, IN_DIM), jnp.float32)

    params = init_net_params(key, IN_DIM, HIDDEN, OUT_DIM, NUM_LAYER)

    # 1) Default config (sigmoid=False), f32 weights.
    out = jax.block_until_ready(net_forward(x, params, sigmoid=False))
    ref = net_forward_ref(x, params, sigmoid=False)
    assert out.shape == (B, OUT_DIM), out.shape
    assert jnp.allclose(out, ref, atol=2e-3, rtol=2e-3), jnp.max(jnp.abs(out - ref))

    # 2) Softmax head (sigmoid=True, out_dim > 1), exact softmax in-kernel.
    out_sm = jax.block_until_ready(net_forward(x, params, sigmoid=True))
    ref_sm = net_forward_ref(x, params, sigmoid=True)
    assert jnp.allclose(out_sm, ref_sm, atol=2e-3, rtol=2e-3), jnp.max(
        jnp.abs(out_sm - ref_sm)
    )

    # 3) Sigmoid head (out_dim == 1).
    params1 = init_net_params(jax.random.PRNGKey(1), IN_DIM, HIDDEN, 1, NUM_LAYER)
    out_sg = jax.block_until_ready(net_forward(x, params1, sigmoid=True))
    ref_sg = net_forward_ref(x, params1, sigmoid=True)
    assert out_sg.shape == (B, 1), out_sg.shape
    assert jnp.allclose(out_sg, ref_sg, atol=2e-3, rtol=2e-3), jnp.max(
        jnp.abs(out_sg - ref_sg)
    )

    # 4) bf16 weights (v6e/v7x MXU / VMEM lever) — looser tolerance.
    out_bf = jax.block_until_ready(
        net_forward(x, params, sigmoid=False, param_dtype=jnp.bfloat16)
    )
    assert jnp.allclose(out_bf, ref, atol=5e-2, rtol=5e-2), jnp.max(
        jnp.abs(out_bf - ref)
    )

    print("KERNEL_OK")
</pallas_src>

<mosaic_0001>
module attributes {stable_mosaic.version = 11 : i64} {
  func.func @_mlp_kernel(%arg0: i32, %arg1: memref<256x4xf32, #tpu.memory_space<vmem>>, %arg2: memref<4x128xf32, #tpu.memory_space<vmem>>, %arg3: memref<1x128xf32, #tpu.memory_space<vmem>>, %arg4: memref<128x128xf32, #tpu.memory_space<vmem>>, %arg5: memref<1x128xf32, #tpu.memory_space<vmem>>, %arg6: memref<128x2xf32, #tpu.memory_space<vmem>>, %arg7: memref<1x2xf32, #tpu.memory_space<vmem>>, %arg8: memref<256x2xf32, #tpu.memory_space<vmem>>) attributes {dimension_semantics = [#tpu.dimension_semantics<parallel>], iteration_bounds = array<i64: 2>, scalar_prefetch = 0 : i64, scratch_operands = 0 : i64, tpu.core_type = #tpu.core_type<tc>, window_params = [{transform_indices = @transform_0, window_bounds = array<i64: 256, 4>}, {pipeline_mode = #tpu.pipeline_mode<synchronous>, transform_indices = @transform_1, window_bounds = array<i64: 4, 128>}, {pipeline_mode = #tpu.pipeline_mode<synchronous>, transform_indices = @transform_2, window_bounds = array<i64: 1, 128>}, {pipeline_mode = #tpu.pipeline_mode<synchronous>, transform_indices = @transform_3, window_bounds = array<i64: 128, 128>}, {pipeline_mode = #tpu.pipeline_mode<synchronous>, transform_indices = @transform_4, window_bounds = array<i64: 1, 128>}, {pipeline_mode = #tpu.pipeline_mode<synchronous>, transform_indices = @transform_5, window_bounds = array<i64: 128, 2>}, {pipeline_mode = #tpu.pipeline_mode<synchronous>, transform_indices = @transform_6, window_bounds = array<i64: 1, 2>}, {transform_indices = @transform_7, window_bounds = array<i64: 256, 2>}]} {
    %c0 = arith.constant 0 : index
    %c0_0 = arith.constant 0 : index
    %0 = vector.load %arg1[%c0, %c0_0] : memref<256x4xf32, #tpu.memory_space<vmem>>, vector<256x4xf32>
    %c0_1 = arith.constant 0 : index
    %c0_2 = arith.constant 0 : index
    %1 = vector.load %arg2[%c0_1, %c0_2] : memref<4x128xf32, #tpu.memory_space<vmem>>, vector<4x128xf32>
    %c0_3 = arith.constant 0 : index
    %c0_4 = arith.constant 0 : index
    %2 = vector.load %arg3[%c0_3, %c0_4] : memref<1x128xf32, #tpu.memory_space<vmem>>, vector<1x128xf32>
    %cst = arith.constant dense<0.000000e+00> : vector<256x128xf32>
    %3 = tpu.matmul %0, %1, %cst {dimension_numbers = #tpu.dot_dimension_numbers<[1], [0], [0], [1], [0, 0, 1, 1], [], []>} : vector<256x4xf32>, vector<4x128xf32>, vector<256x128xf32> -> vector<256x128xf32>
    %4 = vector.broadcast %2 : vector<1x128xf32> to vector<256x128xf32>
    %5 = arith.addf %3, %4 : vector<256x128xf32>
    %cst_5 = arith.constant 0.000000e+00 : f32
    %6 = vector.broadcast %cst_5 : f32 to vector<256x128xf32>
    %7 = arith.maximumf %5, %6 : vector<256x128xf32>
    %c0_6 = arith.constant 0 : index
    %c0_7 = arith.constant 0 : index
    %8 = vector.load %arg4[%c0_6, %c0_7] : memref<128x128xf32, #tpu.memory_space<vmem>>, vector<128x128xf32>
    %c0_8 = arith.constant 0 : index
    %c0_9 = arith.constant 0 : index
    %9 = vector.load %arg5[%c0_8, %c0_9] : memref<1x128xf32, #tpu.memory_space<vmem>>, vector<1x128xf32>
    %cst_10 = arith.constant dense<0.000000e+00> : vector<256x128xf32>
    %10 = tpu.matmul %7, %8, %cst_10 {dimension_numbers = #tpu.dot_dimension_numbers<[1], [0], [0], [1], [0, 0, 1, 1], [], []>} : vector<256x128xf32>, vector<128x128xf32>, vector<256x128xf32> -> vector<256x128xf32>
    %11 = vector.broadcast %9 : vector<1x128xf32> to vector<256x128xf32>
    %12 = arith.addf %10, %11 : vector<256x128xf32>
    %cst_11 = arith.constant 0.000000e+00 : f32
    %13 = vector.broadcast %cst_11 : f32 to vector<256x128xf32>
    %14 = arith.maximumf %12, %13 : vector<256x128xf32>
    %c0_12 = arith.constant 0 : index
    %c0_13 = arith.constant 0 : index
    %15 = vector.load %arg6[%c0_12, %c0_13] : memref<128x2xf32, #tpu.memory_space<vmem>>, vector<128x2xf32>
    %c0_14 = arith.constant 0 : index
    %c0_15 = arith.constant 0 : index
    %16 = vector.load %arg7[%c0_14, %c0_15] : memref<1x2xf32, #tpu.memory_space<vmem>>, vector<1x2xf32>
    %cst_16 = arith.constant dense<0.000000e+00> : vector<256x2xf32>
    %17 = tpu.matmul %14, %15, %cst_16 {dimension_numbers = #tpu.dot_dimension_numbers<[1], [0], [0], [1], [0, 0, 1, 1], [], []>} : vector<256x128xf32>, vector<128x2xf32>, vector<256x2xf32> -> vector<256x2xf32>
    %18 = vector.broadcast %16 : vector<1x2xf32> to vector<256x2xf32>
    %19 = arith.addf %17, %18 : vector<256x2xf32>
    %c0_17 = arith.constant 0 : index
    %c0_18 = arith.constant 0 : index
    %20 = vector.load %arg8[%c0_17, %c0_18] : memref<256x2xf32, #tpu.memory_space<vmem>>, vector<256x2xf32>
    tpu.vector_store %arg8[%c0_17, %c0_18], %19 {strides = array<i32>} : memref<256x2xf32, #tpu.memory_space<vmem>>, vector<256x2xf32>,
    return
  }
  func.func @transform_0(%arg0: i32) -> (i32, i32) {
    %c0_i32 = arith.constant 0 : i32
    %c0_i32_0 = arith.constant 0 : i32
    return %arg0, %c0_i32 : i32, i32
  }
  func.func @transform_1(%arg0: i32) -> (i32, i32) {
    %c0_i32 = arith.constant 0 : i32
    %c0_i32_0 = arith.constant 0 : i32
    %c0_i32_1 = arith.constant 0 : i32
    return %c0_i32, %c0_i32_0 : i32, i32
  }
  func.func @transform_2(%arg0: i32) -> (i32, i32) {
    %c0_i32 = arith.constant 0 : i32
    %c0_i32_0 = arith.constant 0 : i32
    %c0_i32_1 = arith.constant 0 : i32
    return %c0_i32, %c0_i32_0 : i32, i32
  }
  func.func @transform_3(%arg0: i32) -> (i32, i32) {
    %c0_i32 = arith.constant 0 : i32
    %c0_i32_0 = arith.constant 0 : i32
    %c0_i32_1 = arith.constant 0 : i32
    return %c0_i32, %c0_i32_0 : i32, i32
  }
  func.func @transform_4(%arg0: i32) -> (i32, i32) {
    %c0_i32 = arith.constant 0 : i32
    %c0_i32_0 = arith.constant 0 : i32
    %c0_i32_1 = arith.constant 0 : i32
    return %c0_i32, %c0_i32_0 : i32, i32
  }
  func.func @transform_5(%arg0: i32) -> (i32, i32) {
    %c0_i32 = arith.constant 0 : i32
    %c0_i32_0 = arith.constant 0 : i32
    %c0_i32_1 = arith.constant 0 : i32
    return %c0_i32, %c0_i32_0 : i32, i32
  }
  func.func @transform_6(%arg0: i32) -> (i32, i32) {
    %c0_i32 = arith.constant 0 : i32
    %c0_i32_0 = arith.constant 0 : i32
    %c0_i32_1 = arith.constant 0 : i32
    return %c0_i32, %c0_i32_0 : i32, i32
  }
  func.func @transform_7(%arg0: i32) -> (i32, i32) {
    %c0_i32 = arith.constant 0 : i32
    %c0_i32_0 = arith.constant 0 : i32
    return %arg0, %c0_i32 : i32, i32
  }
}

module attributes {stable_mosaic.version = 11 : i64} {
  func.func @_mlp_kernel(%arg0: i32, %arg1: memref<256x4xf32, #tpu.memory_space<vmem>>, %arg2: memref<4x128xf32, #tpu.memory_space<vmem>>, %arg3: memref<1x128xf32, #tpu.memory_space<vmem>>, %arg4: memref<128x128xf32, #tpu.memory_space<vmem>>, %arg5: memref<1x128xf32, #tpu.memory_space<vmem>>, %arg6: memref<128x2xf32, #tpu.memory_space<vmem>>, %arg7: memref<1x2xf32, #tpu.memory_space<vmem>>, %arg8: memref<256x2xf32, #tpu.memory_space<vmem>>) attributes {dimension_semantics = [#tpu.dimension_semantics<parallel>], iteration_bounds = array<i64: 2>, scalar_prefetch = 0 : i64, scratch_operands = 0 : i64, tpu.core_type = #tpu.core_type<tc>, window_params = [{transform_indices = @transform_0, window_bounds = array<i64: 256, 4>}, {pipeline_mode = #tpu.pipeline_mode<synchronous>, transform_indices = @transform_1, window_bounds = array<i64: 4, 128>}, {pipeline_mode = #tpu.pipeline_mode<synchronous>, transform_indices = @transform_2, window_bounds = array<i64: 1, 128>}, {pipeline_mode = #tpu.pipeline_mode<synchronous>, transform_indices = @transform_3, window_bounds = array<i64: 128, 128>}, {pipeline_mode = #tpu.pipeline_mode<synchronous>, transform_indices = @transform_4, window_bounds = array<i64: 1, 128>}, {pipeline_mode = #tpu.pipeline_mode<synchronous>, transform_indices = @transform_5, window_bounds = array<i64: 128, 2>}, {pipeline_mode = #tpu.pipeline_mode<synchronous>, transform_indices = @transform_6, window_bounds = array<i64: 1, 2>}, {transform_indices = @transform_7, window_bounds = array<i64: 256, 2>}]} {
    %c0 = arith.constant 0 : index
    %c0_0 = arith.constant 0 : index
    %0 = vector.load %arg1[%c0, %c0_0] : memref<256x4xf32, #tpu.memory_space<vmem>>, vector<256x4xf32>
    %c0_1 = arith.constant 0 : index
    %c0_2 = arith.constant 0 : index
    %1 = vector.load %arg2[%c0_1, %c0_2] : memref<4x128xf32, #tpu.memory_space<vmem>>, vector<4x128xf32>
    %c0_3 = arith.constant 0 : index
    %c0_4 = arith.constant 0 : index
    %2 = vector.load %arg3[%c0_3, %c0_4] : memref<1x128xf32, #tpu.memory_space<vmem>>, vector<1x128xf32>
    %cst = arith.constant dense<0.000000e+00> : vector<256x128xf32>
    %3 = tpu.matmul %0, %1, %cst {dimension_numbers = #tpu.dot_dimension_numbers<[1], [0], [0], [1], [0, 0, 1, 1], [], []>} : vector<256x4xf32>, vector<4x128xf32>, vector<256x128xf32> -> vector<256x128xf32>
    %4 = vector.broadcast %2 : vector<1x128xf32> to vector<256x128xf32>
    %5 = arith.addf %3, %4 : vector<256x128xf32>
    %cst_5 = arith.constant 0.000000e+00 : f32
    %6 = vector.broadcast %cst_5 : f32 to vector<256x128xf32>
    %7 = arith.maximumf %5, %6 : vector<256x128xf32>
    %c0_6 = arith.constant 0 : index
    %c0_7 = arith.constant 0 : index
    %8 = vector.load %arg4[%c0_6, %c0_7] : memref<128x128xf32, #tpu.memory_space<vmem>>, vector<128x128xf32>
    %c0_8 = arith.constant 0 : index
    %c0_9 = arith.constant 0 : index
    %9 = vector.load %arg5[%c0_8, %c0_9] : memref<1x128xf32, #tpu.memory_space<vmem>>, vector<1x128xf32>
    %cst_10 = arith.constant dense<0.000000e+00> : vector<256x128xf32>
    %10 = tpu.matmul %7, %8, %cst_10 {dimension_numbers = #tpu.dot_dimension_numbers<[1], [0], [0], [1], [0, 0, 1, 1], [], []>} : vector<256x128xf32>, vector<128x128xf32>, vector<256x128xf32> -> vector<256x128xf32>
    %11 = vector.broadcast %9 : vector<1x128xf32> to vector<256x128xf32>
    %12 = arith.addf %10, %11 : vector<256x128xf32>
    %cst_11 = arith.constant 0.000000e+00 : f32
    %13 = vector.broadcast %cst_11 : f32 to vector<256x128xf32>
    %14 = arith.maximumf %12, %13 : vector<256x128xf32>
    %c0_12 = arith.constant 0 : index
    %c0_13 = arith.constant 0 : index
    %15 = vector.load %arg6[%c0_12, %c0_13] : memref<128x2xf32, #tpu.memory_space<vmem>>, vector<128x2xf32>
    %c0_14 = arith.constant 0 : index
    %c0_15 = arith.constant 0 : index
    %16 = vector.load %arg7[%c0_14, %c0_15] : memref<1x2xf32, #tpu.memory_space<vmem>>, vector<1x2xf32>
    %cst_16 = arith.constant dense<0.000000e+00> : vector<256x2xf32>
    %17 = tpu.matmul %14, %15, %cst_16 {dimension_numbers = #tpu.dot_dimension_numbers<[1], [0], [0], [1], [0, 0, 1, 1], [], []>} : vector<256x128xf32>, vector<128x2xf32>, vector<256x2xf32> -> vector<256x2xf32>
    %18 = vector.broadcast %16 : vector<1x2xf32> to vector<256x2xf32>
    %19 = arith.addf %17, %18 : vector<256x2xf32>
    %c0_17 = arith.constant 0 : index
    %c0_18 = arith.constant 0 : index
    %20 = vector.load %arg8[%c0_17, %c0_18] : memref<256x2xf32, #tpu.memory_space<vmem>>, vector<256x2xf32>
    tpu.vector_store %arg8[%c0_17, %c0_18], %19 {strides = array<i32>} : memref<256x2xf32, #tpu.memory_space<vmem>>, vector<256x2xf32>,
    return
  }
  func.func @transform_0(%arg0: i32) -> (i32, i32) {
    %c0_i32 = arith.constant 0 : i32
    %c0_i32_0 = arith.constant 0 : i32
    return %arg0, %c0_i32 : i32, i32
  }
  func.func @transform_1(%arg0: i32) -> (i32, i32) {
    %c0_i32 = arith.constant 0 : i32
    %c0_i32_0 = arith.constant 0 : i32
    %c0_i32_1 = arith.constant 0 : i32
    return %c0_i32, %c0_i32_0 : i32, i32
  }
  func.func @transform_2(%arg0: i32) -> (i32, i32) {
    %c0_i32 = arith.constant 0 : i32
    %c0_i32_0 = arith.constant 0 : i32
    %c0_i32_1 = arith.constant 0 : i32
    return %c0_i32, %c0_i32_0 : i32, i32
  }
  func.func @transform_3(%arg0: i32) -> (i32, i32) {
    %c0_i32 = arith.constant 0 : i32
    %c0_i32_0 = arith.constant 0 : i32
    %c0_i32_1 = arith.constant 0 : i32
    return %c0_i32, %c0_i32_0 : i32, i32
  }
  func.func @transform_4(%arg0: i32) -> (i32, i32) {
    %c0_i32 = arith.constant 0 : i32
    %c0_i32_0 = arith.constant 0 : i32
    %c0_i32_1 = arith.constant 0 : i32
    return %c0_i32, %c0_i32_0 : i32, i32
  }
  func.func @transform_5(%arg0: i32) -> (i32, i32) {
    %c0_i32 = arith.constant 0 : i32
    %c0_i32_0 = arith.constant 0 : i32
    %c0_i32_1 = arith.constant 0 : i32
    return %c0_i32, %c0_i32_0 : i32, i32
  }
  func.func @transform_6(%arg0: i32) -> (i32, i32) {
    %c0_i32 = arith.constant 0 : i32
    %c0_i32_0 = arith.constant 0 : i32
    %c0_i32_1 = arith.constant 0 : i32
    return %c0_i32, %c0_i32_0 : i32, i32
  }
  func.func @transform_7(%arg0: i32) -> (i32, i32) {
    %c0_i32 = arith.constant 0 : i32
    %c0_i32_0 = arith.constant 0 : i32
    return %arg0, %c0_i32 : i32, i32
  }
}

</mosaic_0001>

<bundles_post_ra>
// kernel: tpu_custom_call.1
= control target key start
LH: loop header
LB: loop body
LE: loop exit
PB: predicated region body
PF: predicated region fallthrough
CT: control target
= control target key end

     0   :  { %s1805_s24 = smov 0   ;;  %s2180_s0 = inlined_call_operand.vmem [shape: f32[512,4], index: 0, kind: input, shape index: {}]   ;;  %s2181_s1 = inlined_call_operand.vmem [shape: f32[4,128], index: 1, kind: input, shape index: {}]   ;;  %s2182_s2 = inlined_call_operand.vmem [shape: f32[1,128], index: 2, kind: input, shape index: {}]   ;;  %s2183_s3 = inlined_call_operand.vmem [shape: f32[128,128], index: 3, kind: input, shape index: {}]   ;;  %s2184_s4 = inlined_call_operand.vmem [shape: f32[1,128], index: 4, kind: input, shape index: {}]   ;;  %s2185_s5 = inlined_call_operand.vmem [shape: f32[128,2], index: 5, kind: input, shape index: {}]   ;;  %s2186_s6 = inlined_call_operand.vmem [shape: f32[1,2], index: 6, kind: input, shape index: {}]   ;;  %s2187_s7 = inlined_call_operand.vmem [shape: f32[512,2], index: 7, kind: output, shape index: {}]  }
   0x1 LB: > { %s1297_s25 = sadd.s32 4294967295, %s1763_s24   ;;  %p1301_p0 = scmp.ge.s32.totalorder %s1763_s24, 1  ;;  %s1763_s24 = sphi %s1805_s24, %s17_s24  }
   0x2   : > { %p238_p1 = scmp.lt.s32.totalorder %s1763_s24, 3 }
   0x4   : > { %p239_p2 = pnand %p1301_p0, %p238_p1 }
   0x5   : > { %v314_v0 = vld [vmem:[%s2181_s1] sm:$0xf] (!%p239_p2)  ;;  %vm419_vm0 = vcmask (!%p239_p2), 1043456   ;;  %s1302_s28 = sshll.u32 (!%p239_p2), %s1297_s25, 5  ;;  %v681_v2 = vld [vmem:[%s2183_s3 + $0x8] sm:$0xff] (!%p239_p2)  ;;  %vm322_vm1 = vcmask (!%p239_p2), 31744  }
   0x6   : > { %242 = sbr.rel (%p239_p2) target bundleno = 730 (0x2da), region = 48  ;;  %v680_v1 = vld [vmem:[%s2183_s3] sm:$0xff] (!%p239_p2)  ;;  %1473 = vmatprep.subr.msk.mxu0 (!%p239_p2), %vm419_vm0, %v314_v0  ;;  %p271_p3 = scmp.lt.s32.totalorder (!%p239_p2), %s1302_s28, 63  ;;  %1747 = vmatprep.subr.msk.mxu1 (!%p239_p2), %vm419_vm0, %v314_v0  ;;  %v682_v7 = vld [vmem:[%s2183_s3 + $0x10] sm:$0xff] (!%p239_p2)  ;;  %v683_v8 = vld [vmem:[%s2183_s3 + $0x18] sm:$0xff] (!%p239_p2)  ;;  %vm1208_vm2 = vcmask (!%p239_p2), 15360  }
   0x7   : > { %1474 = vmatpush3.msk.msra.mxu0 (!%p239_p2), %vm419_vm0, %v314_v0  ;;  %1748 = vmatpush3.msk.msra.mxu1 (!%p239_p2), %vm419_vm0, %v314_v0  ;;  %v1683_v3 = vpack.c.bf16 (!%p239_p2), %v681_v2, %v680_v1  ;;  %v1687_v13 = vpack.c.bf16 (!%p239_p2), %v683_v8, %v682_v7  ;;  %v684_v15 = vld [vmem:[%s2183_s3 + $0x20] sm:$0xff] (!%p239_p2)  ;;  %v685_v16 = vld [vmem:[%s2183_s3 + $0x28] sm:$0xff] (!%p239_p2)  ;;  %v686_v22 = vld [vmem:[%s2183_s3 + $0x30] sm:$0xff] (!%p239_p2) }
   0x8   : > { %v1691_v21 = vpack.c.bf16 (!%p239_p2), %v685_v16, %v684_v15  ;;  %v687_v23 = vld [vmem:[%s2183_s3 + $0x38] sm:$0xff] (!%p239_p2)  ;;  %v688_v29 = vld [vmem:[%s2183_s3 + $0x40] sm:$0xff] (!%p239_p2)  ;;  %v689_v30 = vld [vmem:[%s2183_s3 + $0x48] sm:$0xff] (!%p239_p2) }
   0x9   : > { %1684 = vmatprep.subr.bf16.mxu1 (!%p239_p2), %v1683_v3  ;;  %v1695_v28 = vpack.c.bf16 (!%p239_p2), %v687_v23, %v686_v22  ;;  %v1699_v35 = vpack.c.bf16 (!%p239_p2), %v689_v30, %v688_v29  ;;  %v690_v36 = vld [vmem:[%s2183_s3 + $0x50] sm:$0xff] (!%p239_p2)  ;;  %v691_v37 = vld [vmem:[%s2183_s3 + $0x58] sm:$0xff] (!%p239_p2)  ;;  %v692_v43 = vld [vmem:[%s2183_s3 + $0x60] sm:$0xff] (!%p239_p2) }
   0xa   : > { %v1703_v42 = vpack.c.bf16 (!%p239_p2), %v691_v37, %v690_v36  ;;  %v693_v44 = vld [vmem:[%s2183_s3 + $0x68] sm:$0xff] (!%p239_p2)  ;;  %v694_v54 = vld [vmem:[%s2183_s3 + $0x70] sm:$0xff] (!%p239_p2)  ;;  %v695_v55 = vld [vmem:[%s2183_s3 + $0x78] sm:$0xff] (!%p239_p2) }
   0xb   : > { %v1707_v49 = vpack.c.bf16 (!%p239_p2), %v693_v44, %v692_v43  ;;  %v1711_v56 = vpack.c.bf16 (!%p239_p2), %v695_v55, %v694_v54  ;;  %v960_v57 = vld [vmem:[%s2185_s5] sm:$0xff] (!%p239_p2)  ;;  %v961_v58 = vld [vmem:[%s2185_s5 + $0x8] sm:$0xff] (!%p239_p2)  ;;  %v962_v59 = vld [vmem:[%s2185_s5 + $0x10] sm:$0xff] (!%p239_p2) }
   0xc   : > { %v1715_v60 = vpack.c.bf16 (!%p239_p2), %v961_v58, %v960_v57  ;;  %v963_v61 = vld [vmem:[%s2185_s5 + $0x18] sm:$0xff] (!%p239_p2)  ;;  %v964_v63 = vld [vmem:[%s2185_s5 + $0x20] sm:$0xff] (!%p239_p2)  ;;  %v965_v0 = vld [vmem:[%s2185_s5 + $0x28] sm:$0xff] (!%p239_p2) }
   0xd   : > { %s2189_s28 = smov (!%p271_p3, %s1302_s28), 63  ;;  %v1719_v62 = vpack.c.bf16 %v963_v61, %v962_v59  ;;  %v1723_v1 = vpack.c.bf16 %v965_v0, %v964_v63  ;;  %v966_v2 = vld [vmem:[%s2185_s5 + $0x30] sm:$0xff] }
   0xe   : > { %s1303_s10 = sshll.u32 %s2189_s28, 3  ;;  %1716 = vmatprep.subr.bf16.mxu0 %v1715_v60  ;;  %v970_v8 = vld [vmem:[%s2185_s5 + $0x50] sm:$0xff] }
   0xf   : > { %s1830_s13 = scalar_lea.vmem %s2180_s0, %s1303_s10  ;;  %s2079_s23 = scalar_lea.vmem %s2187_s7, %s1303_s10 }
  0x10   : > { %v282_v4 = vld [vmem:[%s1830_s13] sm:$0xff]  ;;  %v283_v5 = vld [vmem:[%s1830_s13 + $0x8] sm:$0xff]  ;;  %v284_v6 = vld [vmem:[%s1830_s13 + $0x10] sm:$0xff] }
  0x11   : > { %1475 = vmatprep.mubr.msk.f32.mxu0 %vm322_vm1, %v282_v4  ;;  %v285_v9 = vld [vmem:[%s1830_s13 + $0x18] sm:$0xff]  ;;  %v286_v10 = vld [vmem:[%s1830_s13 + $0x20] sm:$0xff]  ;;  %v299_v12 = vld [vmem:[%s1830_s13 + $0x88] sm:$0xff] }
  0x12   : > { %1476 = vmatmul.mubr.msk.f32.vlgmr.msra.gmra.mrb[0].mxu0 %vm322_vm1, %v283_v5  ;;  %v298_v11 = vld [vmem:[%s1830_s13 + $0x80] sm:$0xff]  ;;  %v300_v14 = vld [vmem:[%s1830_s13 + $0x90] sm:$0xff]  ;;  %v287_v17 = vld [vmem:[%s1830_s13 + $0x28] sm:$0xff] }
  0x13   : > { %1478 = vmatprep.mubr.msk.f32.mxu0 %vm322_vm1, %v284_v6  ;;  %1499 = vmatprep.mubr.msk.f32.mxu1 %vm322_vm1, %v298_v11  ;;  %v288_v18 = vld [vmem:[%s1830_s13 + $0x30] sm:$0xff]  ;;  %v301_v19 = vld [vmem:[%s1830_s13 + $0x98] sm:$0xff]  ;;  %v302_v20 = vld [vmem:[%s1830_s13 + $0xa0] sm:$0xff] }
  0x14   : > { %1500 = vmatmul.mubr.msk.f32.vlgmr.msra.gmra.mrb[0].mxu1 %vm322_vm1, %v299_v12  ;;  %v289_v24 = vld [vmem:[%s1830_s13 + $0x38] sm:$0xff]  ;;  %v290_v25 = vld [vmem:[%s1830_s13 + $0x40] sm:$0xff]  ;;  %v303_v26 = vld [vmem:[%s1830_s13 + $0xa8] sm:$0xff]  ;;  %1718 = vmatpush3.bf16.msra.mxu0 %v1715_v60 }
  0x15   : > { %1502 = vmatprep.mubr.msk.f32.mxu1 %vm322_vm1, %v300_v14  ;;  %1686 = vmatpush3.bf16.msra.mxu1 %v1683_v3  ;;  %v304_v27 = vld [vmem:[%s1830_s13 + $0xb0] sm:$0xff]  ;;  %v291_v31 = vld [vmem:[%s1830_s13 + $0x48] sm:$0xff]  ;;  %v305_v33 = vld [vmem:[%s1830_s13 + $0xb8] sm:$0xff] }
  0x16   : > { %1479 = vmatmul.mubr.msk.f32.gmra.mrb[2].mxu0 %vm322_vm1, %v285_v9  ;;  %1688 = vmatprep.subr.bf16.mxu1 %v1687_v13  ;;  %v292_v32 = vld [vmem:[%s1830_s13 + $0x50] sm:$0xff]  ;;  %v306_v34 = vld [vmem:[%s1830_s13 + $0xc0] sm:$0xff]  ;;  %v293_v38 = vld [vmem:[%s1830_s13 + $0x58] sm:$0xff] }
  0x17   : > { %1481 = vmatprep.mubr.msk.f32.mxu0 %vm322_vm1, %v286_v10  ;;  %v294_v39 = vld [vmem:[%s1830_s13 + $0x60] sm:$0xff]  ;;  %v307_v40 = vld [vmem:[%s1830_s13 + $0xc8] sm:$0xff]  ;;  %v308_v41 = vld [vmem:[%s1830_s13 + $0xd0] sm:$0xff]  ;;  %1720 = vmatprep.subr.bf16.mxu0 %v1719_v62 }
  0x18   : > { %1503 = vmatmul.mubr.msk.f32.gmra.mrb[2].mxu1 %vm322_vm1, %v301_v19  ;;  %v295_v45 = vld [vmem:[%s1830_s13 + $0x68] sm:$0xff]  ;;  %v296_v46 = vld [vmem:[%s1830_s13 + $0x70] sm:$0xff]  ;;  %v309_v47 = vld [vmem:[%s1830_s13 + $0xd8] sm:$0xff]  ;;  %1722 = vmatpush3.bf16.msra.mxu0 %v1719_v62 }
  0x19   : > { %1505 = vmatprep.mubr.msk.f32.mxu1 %vm322_vm1, %v302_v20  ;;  %1690 = vmatpush3.bf16.msra.mxu1 %v1687_v13  ;;  %v310_v48 = vld [vmem:[%s1830_s13 + $0xe0] sm:$0xff]  ;;  %v297_v50 = vld [vmem:[%s1830_s13 + $0x78] sm:$0xff]  ;;  %v311_v51 = vld [vmem:[%s1830_s13 + $0xe8] sm:$0xff] }
  0x1a   : > { %1482 = vmatmul.mubr.msk.f32.gmra.mrb[4].mxu0 %vm322_vm1, %v287_v17  ;;  %1692 = vmatprep.subr.bf16.mxu1 %v1691_v21  ;;  %v312_v52 = vld [vmem:[%s1830_s13 + $0xf0] sm:$0xff]  ;;  %v313_v53 = vld [vmem:[%s1830_s13 + $0xf8] sm:$0xff]  ;;  %v968_v5 = vld [vmem:[%s2185_s5 + $0x40] sm:$0xff] }
  0x1b   : > { %1484 = vmatprep.mubr.msk.f32.mxu0 %vm322_vm1, %v288_v18  ;;  %v967_v3 = vld [vmem:[%s2185_s5 + $0x38] sm:$0xff]  ;;  %1724 = vmatprep.subr.bf16.mxu0 %v1723_v1  ;;  %v969_v6 = vld [vmem:[%s2185_s5 + $0x48] sm:$0xff]  ;;  %v972_v11 = vld [vmem:[%s2185_s5 + $0x60] sm:$0xff] }
  0x1c   : > { %1506 = vmatmul.mubr.msk.f32.gmra.mrb[4].mxu1 %vm322_vm1, %v303_v26  ;;  %v1727_v4 = vpack.c.bf16 %v967_v3, %v966_v2  ;;  %1726 = vmatpush3.bf16.msra.mxu0 %v1723_v1  ;;  %v1731_v7 = vpack.c.bf16 %v969_v6, %v968_v5  ;;  %v971_v9 = vld [vmem:[%s2185_s5 + $0x58] sm:$0xff]  ;;  %v973_v12 = vld [vmem:[%s2185_s5 + $0x68] sm:$0xff]  ;;  %v1983_v14 = vld [vmem:[%s2182_s2] ss:$0 sm:$0xff] }
  0x1d   : > { %1508 = vmatprep.mubr.msk.f32.mxu1 %vm322_vm1, %v304_v27  ;;  %1694 = vmatpush3.bf16.msra.mxu1 %v1691_v21  ;;  %v1735_v10 = vpack.c.bf16 %v971_v9, %v970_v8  ;;  %v1739_v13 = vpack.c.bf16 %v973_v12, %v972_v11 }
  0x1e   : > { %1485 = vmatmul.mubr.msk.f32.gmra.mrb[6].mxu0 %vm322_vm1, %v289_v24  ;;  %1696 = vmatprep.subr.bf16.mxu1 %v1695_v28 }
  0x1f   : > { %1487 = vmatprep.mubr.msk.f32.mxu0 %vm322_vm1, %v290_v25  ;;  %1728 = vmatprep.subr.bf16.mxu0 %v1727_v4 }
  0x20   : > { %1509 = vmatmul.mubr.msk.f32.gmra.mrb[6].mxu1 %vm322_vm1, %v305_v33  ;;  %1730 = vmatpush3.bf16.msra.mxu0 %v1727_v4 }
  0x21   : > { %1511 = vmatprep.mubr.msk.f32.mxu1 %vm322_vm1, %v306_v34  ;;  %1698 = vmatpush3.bf16.msra.mxu1 %v1695_v28 }
  0x22   : > { %1488 = vmatmul.mubr.msk.f32.gmra.mrb[8].mxu0 %vm322_vm1, %v291_v31  ;;  %1700 = vmatprep.subr.bf16.mxu1 %v1699_v35 }
  0x23   : > { %1490 = vmatprep.mubr.msk.f32.mxu0 %vm322_vm1, %v292_v32  ;;  %1732 = vmatprep.subr.bf16.mxu0 %v1731_v7 }
  0x24   : > { %1512 = vmatmul.mubr.msk.f32.gmra.mrb[8].mxu1 %vm322_vm1, %v307_v40  ;;  %1734 = vmatpush3.bf16.msra.mxu0 %v1731_v7 }
  0x25   : > { %1514 = vmatprep.mubr.msk.f32.mxu1 %vm322_vm1, %v308_v41  ;;  %1702 = vmatpush3.bf16.msra.mxu1 %v1699_v35 }
  0x26   : > { %1491 = vmatmul.mubr.msk.f32.gmra.mrb[10].mxu0 %vm322_vm1, %v293_v38  ;;  %1704 = vmatprep.subr.bf16.mxu1 %v1703_v42 }
  0x27   : > { %1493 = vmatprep.mubr.msk.f32.mxu0 %vm322_vm1, %v294_v39  ;;  %1736 = vmatprep.subr.bf16.mxu0 %v1735_v10 }
  0x28   : > { %1515 = vmatmul.mubr.msk.f32.gmra.mrb[10].mxu1 %vm322_vm1, %v309_v47  ;;  %1738 = vmatpush3.bf16.msra.mxu0 %v1735_v10 }
  0x29   : > { %1517 = vmatprep.mubr.msk.f32.mxu1 %vm322_vm1, %v310_v48  ;;  %1706 = vmatpush3.bf16.msra.mxu1 %v1703_v42 }
  0x2a   : > { %1494 = vmatmul.mubr.msk.f32.gmra.mrb[12].mxu0 %vm322_vm1, %v295_v45  ;;  %1708 = vmatprep.subr.bf16.mxu1 %v1707_v49 }
  0x2b   : > { %1496 = vmatprep.mubr.msk.f32.mxu0 %vm322_vm1, %v296_v46  ;;  %1740 = vmatprep.subr.bf16.mxu0 %v1739_v13 }
  0x2c   : > { %1518 = vmatmul.mubr.msk.f32.gmra.mrb[12].mxu1 %vm322_vm1, %v311_v51  ;;  %1742 = vmatpush3.bf16.msra.mxu0 %v1739_v13 }
  0x2d   : > { %1520 = vmatprep.mubr.msk.f32.mxu1 %vm322_vm1, %v312_v52  ;;  %1710 = vmatpush3.bf16.msra.mxu1 %v1707_v49 }
  0x2e   : > { %1497 = vmatmul.mubr.msk.f32.gmra.mrb[14].mxu0 %vm322_vm1, %v297_v50  ;;  %1712 = vmatprep.subr.bf16.mxu1 %v1711_v56 }
  0x30   : > { %1521 = vmatmul.mubr.msk.f32.gmra.mrb[14].mxu1 %vm322_vm1, %v313_v53 }
  0x31   : > { %1714 = vmatpush3.bf16.msra.mxu1 %v1711_v56 }
  0xe5   : > { %v1477_v15 = vpop.f32.mrb[0].mxu0 }
  0xe6   : > { %v495_v16 = vadd.f32 %v1477_v15, %v1983_v14  ;;  %v489_v17 = vpop.f32.mrb[1].mxu0 }
  0xe7   : > { %v490_v18 = vadd.f32 %v1983_v14, %v489_v17  ;;  %v1988_v24 = vpop.f32.mrb[0].mxu1 }
  0xe8   : > { %v649_v21 = vmax.f32 %v495_v16, 0.0  ;;  %v569_v26 = vpop.f32.mrb[1].mxu1  ;;  %v575_v17 = vadd.f32 %v1988_v24, %v1983_v14 }
  0xe9   : > { %v648_v19 = vmax.f32 %v490_v18, 0.0  ;;  %v1480_v20 = vpop.f32.mrb[2].mxu0  ;;  %v570_v5 = vadd.f32 %v1983_v14, %v569_v26 }
  0xea   : > { %v505_v22 = vadd.f32 %v1480_v20, %v1983_v14  ;;  %v499_v23 = vpop.f32.mrb[3].mxu0 }
  0xeb   : > { %v500_v25 = vadd.f32 %v1983_v14, %v499_v23  ;;  %1555 = vmatprep.mubr.f32.mxu1 %v648_v19  ;;  %v1992_v32 = vpop.f32.mrb[2].mxu1  ;;  %v664_v13 = vmax.f32 %v570_v5, 0.0 }
  0xec   : > { %1556 = vmatmul.mubr.f32.vlgmr.msra.gmra.mrb[16].mxu1 %v649_v21  ;;  %v651_v29 = vmax.f32 %v505_v22, 0.0  ;;  %v579_v34 = vpop.f32.mrb[3].mxu1  ;;  %v665_v22 = vmax.f32 %v575_v17, 0.0  ;;  %v585_v23 = vadd.f32 %v1992_v32, %v1983_v14 }
  0xed   : > { %v650_v27 = vmax.f32 %v500_v25, 0.0  ;;  %v1483_v28 = vpop.f32.mrb[4].mxu0  ;;  %v580_v15 = vadd.f32 %v1983_v14, %v579_v34 }
  0xee   : > { %v515_v30 = vadd.f32 %v1483_v28, %v1983_v14  ;;  %v509_v31 = vpop.f32.mrb[5].mxu0 }
  0xef   : > { %v510_v33 = vadd.f32 %v1983_v14, %v509_v31  ;;  %1558 = vmatprep.mubr.f32.mxu1 %v650_v27  ;;  %v1996_v40 = vpop.f32.mrb[4].mxu1  ;;  %v666_v20 = vmax.f32 %v580_v15, 0.0  ;;  %v667_v27 = vmax.f32 %v585_v23, 0.0 }
  0xf0   : > { %1559 = vmatmul.mubr.f32.gmra.mrb[18].mxu1 %v651_v29  ;;  %v653_v37 = vmax.f32 %v515_v30, 0.0  ;;  %v589_v42 = vpop.f32.mrb[5].mxu1  ;;  %v595_v24 = vadd.f32 %v1996_v40, %v1983_v14 }
  0xf1   : > { %v652_v35 = vmax.f32 %v510_v33, 0.0  ;;  %v1486_v36 = vpop.f32.mrb[6].mxu0  ;;  %v590_v21 = vadd.f32 %v1983_v14, %v589_v42 }
  0xf2   : > { %v525_v38 = vadd.f32 %v1486_v36, %v1983_v14  ;;  %v519_v39 = vpop.f32.mrb[7].mxu0  ;;  %v669_v30 = vmax.f32 %v595_v24, 0.0 }
  0xf3   : > { %v520_v41 = vadd.f32 %v1983_v14, %v519_v39  ;;  %1561 = vmatprep.mubr.f32.mxu1 %v652_v35  ;;  %v1510_v48 = vpop.f32.mrb[6].mxu1  ;;  %v668_v25 = vmax.f32 %v590_v21, 0.0 }
  0xf4   : > { %1562 = vmatmul.mubr.f32.gmra.mrb[20].mxu1 %v653_v37  ;;  %v655_v45 = vmax.f32 %v525_v38, 0.0  ;;  %v599_v50 = vpop.f32.mrb[7].mxu1  ;;  %v605_v31 = vadd.f32 %v1510_v48, %v1983_v14  ;;  %v974_v48 = vld [vmem:[%s2185_s5 + $0x70] sm:$0xff] }
  0xf5   : > { %v654_v43 = vmax.f32 %v520_v41, 0.0  ;;  %v1489_v44 = vpop.f32.mrb[8].mxu0  ;;  %v600_v26 = vadd.f32 %v1983_v14, %v599_v50 }
  0xf6   : > { %v535_v46 = vadd.f32 %v1489_v44, %v1983_v14  ;;  %v529_v47 = vpop.f32.mrb[9].mxu0  ;;  %v671_v34 = vmax.f32 %v605_v31, 0.0 }
  0xf7   : > { %v530_v49 = vadd.f32 %v1983_v14, %v529_v47  ;;  %1564 = vmatprep.mubr.f32.mxu1 %v654_v43  ;;  %v1513_v56 = vpop.f32.mrb[8].mxu1  ;;  %v670_v28 = vmax.f32 %v600_v26, 0.0 }
  0xf8   : > { %1565 = vmatmul.mubr.f32.gmra.mrb[22].mxu1 %v655_v45  ;;  %v657_v53 = vmax.f32 %v535_v46, 0.0  ;;  %v609_v58 = vpop.f32.mrb[9].mxu1  ;;  %v615_v35 = vadd.f32 %v1513_v56, %v1983_v14 }
  0xf9   : > { %v656_v51 = vmax.f32 %v530_v49, 0.0  ;;  %v1492_v52 = vpop.f32.mrb[10].mxu0  ;;  %v610_v29 = vadd.f32 %v1983_v14, %v609_v58  ;;  %v975_v49 = vld [vmem:[%s2185_s5 + $0x78] sm:$0xff] }
  0xfa   : > { %v545_v54 = vadd.f32 %v1492_v52, %v1983_v14  ;;  %v539_v55 = vpop.f32.mrb[11].mxu0  ;;  %v673_v38 = vmax.f32 %v615_v35, 0.0  ;;  %v1743_v50 = vpack.c.bf16 %v975_v49, %v974_v48 }
  0xfb   : > { %v540_v57 = vadd.f32 %v1983_v14, %v539_v55  ;;  %1567 = vmatprep.mubr.f32.mxu1 %v656_v51  ;;  %v1516_v0 = vpop.f32.mrb[10].mxu1  ;;  %v672_v33 = vmax.f32 %v610_v29, 0.0  ;;  %v2035_v51 = vld [vmem:[%s2184_s4] ss:$0 sm:$0xff] }
  0xfc   : > { %1568 = vmatmul.mubr.f32.gmra.mrb[24].mxu1 %v657_v53  ;;  %v659_v61 = vmax.f32 %v545_v54, 0.0  ;;  %v619_v2 = vpop.f32.mrb[11].mxu1  ;;  %v625_v39 = vadd.f32 %v1516_v0, %v1983_v14  ;;  %1744 = vmatprep.subr.bf16.mxu0 %v1743_v50 }
  0xfd   : > { %v658_v59 = vmax.f32 %v540_v57, 0.0  ;;  %v1495_v60 = vpop.f32.mrb[12].mxu0  ;;  %v620_v32 = vadd.f32 %v1983_v14, %v619_v2  ;;  %1746 = vmatpush3.bf16.msra.mxu0 %v1743_v50 }
  0xfe   : > { %v555_v62 = vadd.f32 %v1495_v60, %v1983_v14  ;;  %v549_v63 = vpop.f32.mrb[13].mxu0  ;;  %v675_v42 = vmax.f32 %v625_v39, 0.0 }
  0xff   : > { %v550_v1 = vadd.f32 %v1983_v14, %v549_v63  ;;  %1570 = vmatprep.mubr.f32.mxu1 %v658_v59  ;;  %v1519_v9 = vpop.f32.mrb[12].mxu1  ;;  %v674_v36 = vmax.f32 %v620_v32, 0.0 }
 0x100   : > { %1571 = vmatmul.mubr.f32.gmra.mrb[26].mxu1 %v659_v61  ;;  %v661_v6 = vmax.f32 %v555_v62, 0.0  ;;  %v629_v11 = vpop.f32.mrb[13].mxu1  ;;  %v635_v43 = vadd.f32 %v1519_v9, %v1983_v14 }
 0x101   : > { %v660_v3 = vmax.f32 %v550_v1, 0.0  ;;  %v1498_v4 = vpop.f32.mrb[14].mxu0  ;;  %v630_v37 = vadd.f32 %v1983_v14, %v629_v11 }
 0x102   : > { %v565_v7 = vadd.f32 %v1498_v4, %v1983_v14  ;;  %v559_v8 = vpop.f32.mrb[15].mxu0  ;;  %v677_v45 = vmax.f32 %v635_v43, 0.0 }
 0x103   : > { %v560_v10 = vadd.f32 %v1983_v14, %v559_v8  ;;  %1573 = vmatprep.mubr.f32.mxu1 %v660_v3  ;;  %v1522_v18 = vpop.f32.mrb[14].mxu1  ;;  %v676_v40 = vmax.f32 %v630_v37, 0.0 }
 0x104   : > { %1574 = vmatmul.mubr.f32.gmra.mrb[28].mxu1 %v661_v6  ;;  %v663_v16 = vmax.f32 %v565_v7, 0.0  ;;  %v639_v19 = vpop.f32.mrb[15].mxu1  ;;  %v645_v46 = vadd.f32 %v1522_v18, %v1983_v14 }
 0x105   : > { %v662_v12 = vmax.f32 %v560_v10, 0.0  ;;  %v640_v41 = vadd.f32 %v1983_v14, %v639_v19 }
 0x106   : > { %v679_v47 = vmax.f32 %v645_v46, 0.0 }
 0x107   : > { %1576 = vmatprep.mubr.f32.mxu1 %v662_v12  ;;  %v678_v44 = vmax.f32 %v640_v41, 0.0 }
 0x108   : > { %1577 = vmatmul.mubr.f32.gmra.mrb[30].mxu1 %v663_v16 }
 0x109   : > { %1579 = vmatprep.mubr.f32.mxu1 %v664_v13 }
 0x10c   : > { %1580 = vmatmul.mubr.f32.gmra.mrb[32].mxu1 %v665_v22 }
 0x10d   : > { %1582 = vmatprep.mubr.f32.mxu1 %v666_v20 }
 0x110   : > { %1583 = vmatmul.mubr.f32.gmra.mrb[34].mxu1 %v667_v27 }
 0x111   : > { %1585 = vmatprep.mubr.f32.mxu1 %v668_v25 }
 0x114   : > { %1586 = vmatmul.mubr.f32.gmra.mrb[36].mxu1 %v669_v30 }
 0x115   : > { %1588 = vmatprep.mubr.f32.mxu1 %v670_v28 }
 0x118   : > { %1589 = vmatmul.mubr.f32.gmra.mrb[38].mxu1 %v671_v34 }
 0x119   : > { %1591 = vmatprep.mubr.f32.mxu1 %v672_v33 }
 0x11c   : > { %1592 = vmatmul.mubr.f32.gmra.mrb[40].mxu1 %v673_v38 }
 0x11d   : > { %1594 = vmatprep.mubr.f32.mxu1 %v674_v36 }
 0x120   : > { %1595 = vmatmul.mubr.f32.gmra.mrb[42].mxu1 %v675_v42 }
 0x121   : > { %1597 = vmatprep.mubr.f32.mxu1 %v676_v40 }
 0x124   : > { %1598 = vmatmul.mubr.f32.gmra.mrb[44].mxu1 %v677_v45 }
 0x125   : > { %1600 = vmatprep.mubr.f32.mxu1 %v678_v44 }
 0x128   : > { %1601 = vmatmul.mubr.f32.gmra.mrb[46].mxu1 %v679_v47 }
 0x1bf   : > { %v1557_v14 = vpop.f32.mrb[16].mxu1 }
 0x1c0   : > { %v775_v52 = vadd.f32 %v1557_v14, %v2035_v51  ;;  %v769_v53 = vpop.f32.mrb[17].mxu1 }
 0x1c1   : > { %v770_v54 = vadd.f32 %v2035_v51, %v769_v53 }
 0x1c2   : > { %v929_v57 = vmax.f32 %v775_v52, 0.0 }
 0x1c3   : > { %v928_v55 = vmax.f32 %v770_v54, 0.0  ;;  %v1560_v56 = vpop.f32.mrb[18].mxu1 }
 0x1c4   : > { %v785_v58 = vadd.f32 %v1560_v56, %v2035_v51  ;;  %v779_v59 = vpop.f32.mrb[19].mxu1 }
 0x1c5   : > { %v780_v60 = vadd.f32 %v2035_v51, %v779_v59  ;;  %1635 = vmatprep.mubr.f32.mxu0 %v928_v55 }
 0x1c6   : > { %1636 = vmatmul.mubr.f32.vlgmr.msra.gmra.mrb[16].mxu0 %v929_v57  ;;  %v931_v63 = vmax.f32 %v785_v58, 0.0 }
 0x1c7   : > { %v930_v61 = vmax.f32 %v780_v60, 0.0  ;;  %v1563_v62 = vpop.f32.mrb[20].mxu1 }
 0x1c8   : > { %v795_v0 = vadd.f32 %v1563_v62, %v2035_v51  ;;  %v789_v1 = vpop.f32.mrb[21].mxu1 }
 0x1c9   : > { %v790_v2 = vadd.f32 %v2035_v51, %v789_v1  ;;  %1638 = vmatprep.mubr.f32.mxu0 %v930_v61 }
 0x1ca   : > { %1639 = vmatmul.mubr.f32.gmra.mrb[18].mxu0 %v931_v63  ;;  %v933_v5 = vmax.f32 %v795_v0, 0.0 }
 0x1cb   : > { %v932_v3 = vmax.f32 %v790_v2, 0.0  ;;  %v1566_v4 = vpop.f32.mrb[22].mxu1 }
 0x1cc   : > { %v805_v6 = vadd.f32 %v1566_v4, %v2035_v51  ;;  %v799_v7 = vpop.f32.mrb[23].mxu1 }
 0x1cd   : > { %v800_v8 = vadd.f32 %v2035_v51, %v799_v7  ;;  %1641 = vmatprep.mubr.f32.mxu0 %v932_v3 }
 0x1ce   : > { %1642 = vmatmul.mubr.f32.gmra.mrb[20].mxu0 %v933_v5  ;;  %v935_v11 = vmax.f32 %v805_v6, 0.0 }
 0x1cf   : > { %v934_v9 = vmax.f32 %v800_v8, 0.0  ;;  %v1569_v10 = vpop.f32.mrb[24].mxu1 }
 0x1d0   : > { %v815_v12 = vadd.f32 %v1569_v10, %v2035_v51  ;;  %v809_v13 = vpop.f32.mrb[25].mxu1 }
 0x1d1   : > { %v810_v15 = vadd.f32 %v2035_v51, %v809_v13  ;;  %1644 = vmatprep.mubr.f32.mxu0 %v934_v9 }
 0x1d2   : > { %1645 = vmatmul.mubr.f32.gmra.mrb[22].mxu0 %v935_v11  ;;  %v937_v18 = vmax.f32 %v815_v12, 0.0 }
 0x1d3   : > { %v936_v16 = vmax.f32 %v810_v15, 0.0  ;;  %v1572_v17 = vpop.f32.mrb[26].mxu1 }
 0x1d4   : > { %v825_v19 = vadd.f32 %v1572_v17, %v2035_v51  ;;  %v819_v20 = vpop.f32.mrb[27].mxu1 }
 0x1d5   : > { %v820_v21 = vadd.f32 %v2035_v51, %v819_v20  ;;  %1647 = vmatprep.mubr.f32.mxu0 %v936_v16 }
 0x1d6   : > { %1648 = vmatmul.mubr.f32.gmra.mrb[24].mxu0 %v937_v18  ;;  %v939_v25 = vmax.f32 %v825_v19, 0.0 }
 0x1d7   : > { %v938_v22 = vmax.f32 %v820_v21, 0.0  ;;  %v1575_v23 = vpop.f32.mrb[28].mxu1  ;;  %v2072_v21 = vld [vmem:[%s2186_s6] ss:$0 sm:$0xff] }
 0x1d8   : > { %v835_v26 = vadd.f32 %v1575_v23, %v2035_v51  ;;  %v829_v27 = vpop.f32.mrb[29].mxu1 }
 0x1d9   : > { %v830_v24 = vadd.f32 %v2035_v51, %v829_v27  ;;  %1650 = vmatprep.mubr.f32.mxu0 %v938_v22 }
 0x1da   : > { %1651 = vmatmul.mubr.f32.gmra.mrb[26].mxu0 %v939_v25  ;;  %v941_v30 = vmax.f32 %v835_v26, 0.0 }
 0x1db   : > { %v940_v28 = vmax.f32 %v830_v24, 0.0  ;;  %v1578_v29 = vpop.f32.mrb[30].mxu1 }
 0x1dc   : > { %v845_v31 = vadd.f32 %v1578_v29, %v2035_v51  ;;  %v839_v33 = vpop.f32.mrb[31].mxu1 }
 0x1dd   : > { %v840_v32 = vadd.f32 %v2035_v51, %v839_v33  ;;  %1653 = vmatprep.mubr.f32.mxu0 %v940_v28 }
 0x1de   : > { %1654 = vmatmul.mubr.f32.gmra.mrb[28].mxu0 %v941_v30  ;;  %v943_v36 = vmax.f32 %v845_v31, 0.0 }
 0x1df   : > { %v942_v34 = vmax.f32 %v840_v32, 0.0  ;;  %v1581_v35 = vpop.f32.mrb[32].mxu1 }
 0x1e0   : > { %v855_v37 = vadd.f32 %v1581_v35, %v2035_v51  ;;  %v849_v38 = vpop.f32.mrb[33].mxu1 }
 0x1e1   : > { %v850_v39 = vadd.f32 %v2035_v51, %v849_v38  ;;  %1656 = vmatprep.mubr.f32.mxu0 %v942_v34 }
 0x1e2   : > { %1657 = vmatmul.mubr.f32.gmra.mrb[30].mxu0 %v943_v36  ;;  %v945_v42 = vmax.f32 %v855_v37, 0.0 }
 0x1e3   : > { %v944_v40 = vmax.f32 %v850_v39, 0.0  ;;  %v1584_v41 = vpop.f32.mrb[34].mxu1 }
 0x1e4   : > { %v865_v43 = vadd.f32 %v1584_v41, %v2035_v51  ;;  %v859_v44 = vpop.f32.mrb[35].mxu1 }
 0x1e5   : > { %v860_v45 = vadd.f32 %v2035_v51, %v859_v44  ;;  %1659 = vmatprep.mubr.f32.mxu0 %v944_v40 }
 0x1e6   : > { %1660 = vmatmul.mubr.f32.gmra.mrb[32].mxu0 %v945_v42  ;;  %v947_v48 = vmax.f32 %v865_v43, 0.0 }
 0x1e7   : > { %v946_v46 = vmax.f32 %v860_v45, 0.0  ;;  %v1587_v47 = vpop.f32.mrb[36].mxu1 }
 0x1e8   : > { %v875_v49 = vadd.f32 %v1587_v47, %v2035_v51  ;;  %v869_v50 = vpop.f32.mrb[37].mxu1 }
 0x1e9   : > { %v870_v14 = vadd.f32 %v2035_v51, %v869_v50  ;;  %1662 = vmatprep.mubr.f32.mxu0 %v946_v46 }
 0x1ea   : > { %1663 = vmatmul.mubr.f32.gmra.mrb[34].mxu0 %v947_v48  ;;  %v949_v54 = vmax.f32 %v875_v49, 0.0 }
 0x1eb   : > { %v948_v52 = vmax.f32 %v870_v14, 0.0  ;;  %v1590_v53 = vpop.f32.mrb[38].mxu1 }
 0x1ec   : > { %v885_v55 = vadd.f32 %v1590_v53, %v2035_v51  ;;  %v879_v56 = vpop.f32.mrb[39].mxu1 }
 0x1ed   : > { %v880_v57 = vadd.f32 %v2035_v51, %v879_v56  ;;  %1665 = vmatprep.mubr.f32.mxu0 %v948_v52 }
 0x1ee   : > { %1666 = vmatmul.mubr.f32.gmra.mrb[36].mxu0 %v949_v54  ;;  %v951_v60 = vmax.f32 %v885_v55, 0.0 }
 0x1ef   : > { %v950_v58 = vmax.f32 %v880_v57, 0.0  ;;  %v1593_v59 = vpop.f32.mrb[40].mxu1 }
 0x1f0   : > { %v895_v61 = vadd.f32 %v1593_v59, %v2035_v51  ;;  %v889_v62 = vpop.f32.mrb[41].mxu1 }
 0x1f1   : > { %v890_v63 = vadd.f32 %v2035_v51, %v889_v62  ;;  %1668 = vmatprep.mubr.f32.mxu0 %v950_v58 }
 0x1f2   : > { %1669 = vmatmul.mubr.f32.gmra.mrb[38].mxu0 %v951_v60  ;;  %v953_v2 = vmax.f32 %v895_v61, 0.0 }
 0x1f3   : > { %v952_v0 = vmax.f32 %v890_v63, 0.0  ;;  %v1596_v1 = vpop.f32.mrb[42].mxu1 }
 0x1f4   : > { %v905_v3 = vadd.f32 %v1596_v1, %v2035_v51  ;;  %v899_v4 = vpop.f32.mrb[43].mxu1 }
 0x1f5   : > { %v900_v5 = vadd.f32 %v2035_v51, %v899_v4  ;;  %1671 = vmatprep.mubr.f32.mxu0 %v952_v0 }
 0x1f6   : > { %1672 = vmatmul.mubr.f32.gmra.mrb[40].mxu0 %v953_v2  ;;  %v955_v8 = vmax.f32 %v905_v3, 0.0 }
 0x1f7   : > { %v954_v6 = vmax.f32 %v900_v5, 0.0  ;;  %v1599_v7 = vpop.f32.mrb[44].mxu1 }
 0x1f8   : > { %v915_v9 = vadd.f32 %v1599_v7, %v2035_v51  ;;  %v909_v10 = vpop.f32.mrb[45].mxu1 }
 0x1f9   : > { %v910_v11 = vadd.f32 %v2035_v51, %v909_v10  ;;  %1674 = vmatprep.mubr.f32.mxu0 %v954_v6 }
 0x1fa   : > { %1675 = vmatmul.mubr.f32.gmra.mrb[42].mxu0 %v955_v8  ;;  %v957_v15 = vmax.f32 %v915_v9, 0.0 }
 0x1fb   : > { %v956_v12 = vmax.f32 %v910_v11, 0.0  ;;  %v1602_v13 = vpop.f32.mrb[46].mxu1 }
 0x1fc   : > { %v925_v16 = vadd.f32 %v1602_v13, %v2035_v51  ;;  %v919_v17 = vpop.f32.mrb[47].mxu1 }
 0x1fd   : > { %v920_v18 = vadd.f32 %v2035_v51, %v919_v17  ;;  %1677 = vmatprep.mubr.f32.mxu0 %v956_v12 }
 0x1fe   : > { %1678 = vmatmul.mubr.f32.gmra.mrb[44].mxu0 %v957_v15  ;;  %v959_v20 = vmax.f32 %v925_v16, 0.0 }
 0x1ff   : > { %v958_v19 = vmax.f32 %v920_v18, 0.0 }
 0x201   : > { %1680 = vmatprep.mubr.f32.mxu0 %v958_v19 }
 0x202   : > { %1681 = vmatmul.mubr.f32.gmra.mrb[46].mxu0 %v959_v20 }
 0x299   : > { %v1637_v51 = vpop.f32.mrb[16].mxu0 }
 0x29a   : > { %v1055_v22 = vadd.f32 %v1637_v51, %v2072_v21  ;;  %v1049_v23 = vpop.f32.mrb[17].mxu0 }
 0x29b   : > { %v1050_v25 = vadd.f32 %v2072_v21, %v1049_v23 }
 0x29c   : > { %1210 = vst.msk [vmem:[%s2079_s23 + $0x8] sm:$0xff] %vm1208_vm2, %v1055_v22 }
 0x29d   : > { %1209 = vst.msk [vmem:[%s2079_s23] sm:$0xff] %vm1208_vm2, %v1050_v25  ;;  %v1640_v26 = vpop.f32.mrb[18].mxu0 }
 0x29e   : > { %v1065_v27 = vadd.f32 %v1640_v26, %v2072_v21  ;;  %v1059_v24 = vpop.f32.mrb[19].mxu0 }
 0x29f   : > { %v1060_v28 = vadd.f32 %v2072_v21, %v1059_v24 }
 0x2a0   : > { %1212 = vst.msk [vmem:[%s2079_s23 + $0x18] sm:$0xff] %vm1208_vm2, %v1065_v27 }
 0x2a1   : > { %1211 = vst.msk [vmem:[%s2079_s23 + $0x10] sm:$0xff] %vm1208_vm2, %v1060_v28  ;;  %v1643_v29 = vpop.f32.mrb[20].mxu0 }
 0x2a2   : > { %v1075_v30 = vadd.f32 %v1643_v29, %v2072_v21  ;;  %v1069_v31 = vpop.f32.mrb[21].mxu0 }
 0x2a3   : > { %v1070_v33 = vadd.f32 %v2072_v21, %v1069_v31 }
 0x2a4   : > { %1214 = vst.msk [vmem:[%s2079_s23 + $0x28] sm:$0xff] %vm1208_vm2, %v1075_v30 }
 0x2a5   : > { %1213 = vst.msk [vmem:[%s2079_s23 + $0x20] sm:$0xff] %vm1208_vm2, %v1070_v33  ;;  %v1646_v32 = vpop.f32.mrb[22].mxu0 }
 0x2a6   : > { %v1085_v34 = vadd.f32 %v1646_v32, %v2072_v21  ;;  %v1079_v35 = vpop.f32.mrb[23].mxu0 }
 0x2a7   : > { %v1080_v36 = vadd.f32 %v2072_v21, %v1079_v35 }
 0x2a8   : > { %1216 = vst.msk [vmem:[%s2079_s23 + $0x38] sm:$0xff] %vm1208_vm2, %v1085_v34 }
 0x2a9   : > { %1215 = vst.msk [vmem:[%s2079_s23 + $0x30] sm:$0xff] %vm1208_vm2, %v1080_v36  ;;  %v1649_v37 = vpop.f32.mrb[24].mxu0 }
 0x2aa   : > { %v1095_v38 = vadd.f32 %v1649_v37, %v2072_v21  ;;  %v1089_v39 = vpop.f32.mrb[25].mxu0 }
 0x2ab   : > { %v1090_v40 = vadd.f32 %v2072_v21, %v1089_v39 }
 0x2ac   : > { %1218 = vst.msk [vmem:[%s2079_s23 + $0x48] sm:$0xff] %vm1208_vm2, %v1095_v38 }
 0x2ad   : > { %1217 = vst.msk [vmem:[%s2079_s23 + $0x40] sm:$0xff] %vm1208_vm2, %v1090_v40  ;;  %v1652_v41 = vpop.f32.mrb[26].mxu0 }
 0x2ae   : > { %v1105_v42 = vadd.f32 %v1652_v41, %v2072_v21  ;;  %v1099_v43 = vpop.f32.mrb[27].mxu0 }
 0x2af   : > { %v1100_v44 = vadd.f32 %v2072_v21, %v1099_v43 }
 0x2b0   : > { %1220 = vst.msk [vmem:[%s2079_s23 + $0x58] sm:$0xff] %vm1208_vm2, %v1105_v42 }
 0x2b1   : > { %1219 = vst.msk [vmem:[%s2079_s23 + $0x50] sm:$0xff] %vm1208_vm2, %v1100_v44  ;;  %v1655_v45 = vpop.f32.mrb[28].mxu0 }
 0x2b2   : > { %v1115_v46 = vadd.f32 %v1655_v45, %v2072_v21  ;;  %v1109_v47 = vpop.f32.mrb[29].mxu0 }
 0x2b3   : > { %v1110_v48 = vadd.f32 %v2072_v21, %v1109_v47 }
 0x2b4   : > { %1222 = vst.msk [vmem:[%s2079_s23 + $0x68] sm:$0xff] %vm1208_vm2, %v1115_v46 }
 0x2b5   : > { %1221 = vst.msk [vmem:[%s2079_s23 + $0x60] sm:$0xff] %vm1208_vm2, %v1110_v48  ;;  %v1658_v49 = vpop.f32.mrb[30].mxu0 }
 0x2b6   : > { %v1125_v50 = vadd.f32 %v1658_v49, %v2072_v21  ;;  %v1119_v14 = vpop.f32.mrb[31].mxu0 }
 0x2b7   : > { %v1120_v52 = vadd.f32 %v2072_v21, %v1119_v14 }
 0x2b8   : > { %1224 = vst.msk [vmem:[%s2079_s23 + $0x78] sm:$0xff] %vm1208_vm2, %v1125_v50 }
 0x2b9   : > { %1223 = vst.msk [vmem:[%s2079_s23 + $0x70] sm:$0xff] %vm1208_vm2, %v1120_v52  ;;  %v1661_v53 = vpop.f32.mrb[32].mxu0 }
 0x2ba   : > { %v1135_v54 = vadd.f32 %v1661_v53, %v2072_v21  ;;  %v1129_v55 = vpop.f32.mrb[33].mxu0 }
 0x2bb   : > { %v1130_v56 = vadd.f32 %v2072_v21, %v1129_v55 }
 0x2bc   : > { %1226 = vst.msk [vmem:[%s2079_s23 + $0x88] sm:$0xff] %vm1208_vm2, %v1135_v54 }
 0x2bd   : > { %1225 = vst.msk [vmem:[%s2079_s23 + $0x80] sm:$0xff] %vm1208_vm2, %v1130_v56  ;;  %v1664_v57 = vpop.f32.mrb[34].mxu0 }
 0x2be   : > { %v1145_v58 = vadd.f32 %v1664_v57, %v2072_v21  ;;  %v1139_v59 = vpop.f32.mrb[35].mxu0 }
 0x2bf   : > { %v1140_v60 = vadd.f32 %v2072_v21, %v1139_v59 }
 0x2c0   : > { %1228 = vst.msk [vmem:[%s2079_s23 + $0x98] sm:$0xff] %vm1208_vm2, %v1145_v58 }
 0x2c1   : > { %1227 = vst.msk [vmem:[%s2079_s23 + $0x90] sm:$0xff] %vm1208_vm2, %v1140_v60  ;;  %v1667_v61 = vpop.f32.mrb[36].mxu0 }
 0x2c2   : > { %v1155_v62 = vadd.f32 %v1667_v61, %v2072_v21  ;;  %v1149_v63 = vpop.f32.mrb[37].mxu0 }
 0x2c3   : > { %v1150_v0 = vadd.f32 %v2072_v21, %v1149_v63 }
 0x2c4   : > { %1230 = vst.msk [vmem:[%s2079_s23 + $0xa8] sm:$0xff] %vm1208_vm2, %v1155_v62 }
 0x2c5   : > { %1229 = vst.msk [vmem:[%s2079_s23 + $0xa0] sm:$0xff] %vm1208_vm2, %v1150_v0  ;;  %v1670_v1 = vpop.f32.mrb[38].mxu0 }
 0x2c6   : > { %v1165_v2 = vadd.f32 %v1670_v1, %v2072_v21  ;;  %v1159_v3 = vpop.f32.mrb[39].mxu0 }
 0x2c7   : > { %v1160_v4 = vadd.f32 %v2072_v21, %v1159_v3 }
 0x2c8   : > { %1232 = vst.msk [vmem:[%s2079_s23 + $0xb8] sm:$0xff] %vm1208_vm2, %v1165_v2 }
 0x2c9   : > { %1231 = vst.msk [vmem:[%s2079_s23 + $0xb0] sm:$0xff] %vm1208_vm2, %v1160_v4  ;;  %v1673_v5 = vpop.f32.mrb[40].mxu0 }
 0x2ca   : > { %v1175_v6 = vadd.f32 %v1673_v5, %v2072_v21  ;;  %v1169_v7 = vpop.f32.mrb[41].mxu0 }
 0x2cb   : > { %v1170_v8 = vadd.f32 %v2072_v21, %v1169_v7 }
 0x2cc   : > { %1234 = vst.msk [vmem:[%s2079_s23 + $0xc8] sm:$0xff] %vm1208_vm2, %v1175_v6 }
 0x2cd   : > { %1233 = vst.msk [vmem:[%s2079_s23 + $0xc0] sm:$0xff] %vm1208_vm2, %v1170_v8  ;;  %v1676_v9 = vpop.f32.mrb[42].mxu0 }
 0x2ce   : > { %v1185_v10 = vadd.f32 %v1676_v9, %v2072_v21  ;;  %v1179_v11 = vpop.f32.mrb[43].mxu0 }
 0x2cf   : > { %v1180_v12 = vadd.f32 %v2072_v21, %v1179_v11 }
 0x2d0   : > { %1236 = vst.msk [vmem:[%s2079_s23 + $0xd8] sm:$0xff] %vm1208_vm2, %v1185_v10 }
 0x2d1   : > { %1235 = vst.msk [vmem:[%s2079_s23 + $0xd0] sm:$0xff] %vm1208_vm2, %v1180_v12  ;;  %v1679_v13 = vpop.f32.mrb[44].mxu0 }
 0x2d2   : > { %v1195_v15 = vadd.f32 %v1679_v13, %v2072_v21  ;;  %v1189_v16 = vpop.f32.mrb[45].mxu0 }
 0x2d3   : > { %v1190_v17 = vadd.f32 %v2072_v21, %v1189_v16 }
 0x2d4   : > { %1238 = vst.msk [vmem:[%s2079_s23 + $0xe8] sm:$0xff] %vm1208_vm2, %v1195_v15 }
 0x2d5   : > { %1237 = vst.msk [vmem:[%s2079_s23 + $0xe0] sm:$0xff] %vm1208_vm2, %v1190_v17  ;;  %v1682_v18 = vpop.f32.mrb[46].mxu0 }
 0x2d6   : > { %v1205_v19 = vadd.f32 %v1682_v18, %v2072_v21  ;;  %v1199_v20 = vpop.f32.mrb[47].mxu0 }
 0x2d7   : > { %v1200_v51 = vadd.f32 %v2072_v21, %v1199_v20 }
 0x2d8   : > { %1240 = vst.msk [vmem:[%s2079_s23 + $0xf8] sm:$0xff] %vm1208_vm2, %v1205_v19 }
 0x2d9   : > { %1239 = vst.msk [vmem:[%s2079_s23 + $0xf0] sm:$0xff] %vm1208_vm2, %v1200_v51 }
 0x2da PF: > { %s17_s24 = sadd.s32 1, %s1763_s24  }
 0x2db   : > { %p14_p4 = scmp.ge.s32.totalorder %s17_s24, 4  }
 0x2dd   :  { %16 = sbr.rel (!%p14_p4) target bundleno = 1 (0x1), region = 78 }

// kernel: tpu_custom_call.1
= control target key start
LH: loop header
LB: loop body
LE: loop exit
PB: predicated region body
PF: predicated region fallthrough
CT: control target
= control target key end

     0   :  { %s1805_s24 = smov 0   ;;  %s2180_s0 = inlined_call_operand.vmem [shape: f32[512,4], index: 0, kind: input, shape index: {}]   ;;  %s2181_s1 = inlined_call_operand.vmem [shape: f32[4,128], index: 1, kind: input, shape index: {}]   ;;  %s2182_s2 = inlined_call_operand.vmem [shape: f32[1,128], index: 2, kind: input, shape index: {}]   ;;  %s2183_s3 = inlined_call_operand.vmem [shape: f32[128,128], index: 3, kind: input, shape index: {}]   ;;  %s2184_s4 = inlined_call_operand.vmem [shape: f32[1,128], index: 4, kind: input, shape index: {}]   ;;  %s2185_s5 = inlined_call_operand.vmem [shape: f32[128,2], index: 5, kind: input, shape index: {}]   ;;  %s2186_s6 = inlined_call_operand.vmem [shape: f32[1,2], index: 6, kind: input, shape index: {}]   ;;  %s2187_s7 = inlined_call_operand.vmem [shape: f32[512,2], index: 7, kind: output, shape index: {}]  }
   0x1 LB: > { %s1297_s25 = sadd.s32 4294967295, %s1763_s24   ;;  %p1301_p0 = scmp.ge.s32.totalorder %s1763_s24, 1  ;;  %s1763_s24 = sphi %s1805_s24, %s17_s24  }
   0x2   : > { %p238_p1 = scmp.lt.s32.totalorder %s1763_s24, 3 }
   0x4   : > { %p239_p2 = pnand %p1301_p0, %p238_p1 }
   0x5   : > { %v314_v0 = vld [vmem:[%s2181_s1] sm:$0xf] (!%p239_p2)  ;;  %vm419_vm0 = vcmask (!%p239_p2), 1043456   ;;  %s1302_s28 = sshll.u32 (!%p239_p2), %s1297_s25, 5  ;;  %v681_v2 = vld [vmem:[%s2183_s3 + $0x8] sm:$0xff] (!%p239_p2)  ;;  %vm322_vm1 = vcmask (!%p239_p2), 31744  }
   0x6   : > { %242 = sbr.rel (%p239_p2) target bundleno = 730 (0x2da), region = 48  ;;  %v680_v1 = vld [vmem:[%s2183_s3] sm:$0xff] (!%p239_p2)  ;;  %1473 = vmatprep.subr.msk.mxu0 (!%p239_p2), %vm419_vm0, %v314_v0  ;;  %p271_p3 = scmp.lt.s32.totalorder (!%p239_p2), %s1302_s28, 63  ;;  %1747 = vmatprep.subr.msk.mxu1 (!%p239_p2), %vm419_vm0, %v314_v0  ;;  %v682_v7 = vld [vmem:[%s2183_s3 + $0x10] sm:$0xff] (!%p239_p2)  ;;  %v683_v8 = vld [vmem:[%s2183_s3 + $0x18] sm:$0xff] (!%p239_p2)  ;;  %vm1208_vm2 = vcmask (!%p239_p2), 15360  }
   0x7   : > { %1474 = vmatpush3.msk.msra.mxu0 (!%p239_p2), %vm419_vm0, %v314_v0  ;;  %1748 = vmatpush3.msk.msra.mxu1 (!%p239_p2), %vm419_vm0, %v314_v0  ;;  %v1683_v3 = vpack.c.bf16 (!%p239_p2), %v681_v2, %v680_v1  ;;  %v1687_v13 = vpack.c.bf16 (!%p239_p2), %v683_v8, %v682_v7  ;;  %v684_v15 = vld [vmem:[%s2183_s3 + $0x20] sm:$0xff] (!%p239_p2)  ;;  %v685_v16 = vld [vmem:[%s2183_s3 + $0x28] sm:$0xff] (!%p239_p2)  ;;  %v686_v22 = vld [vmem:[%s2183_s3 + $0x30] sm:$0xff] (!%p239_p2) }
   0x8   : > { %v1691_v21 = vpack.c.bf16 (!%p239_p2), %v685_v16, %v684_v15  ;;  %v687_v23 = vld [vmem:[%s2183_s3 + $0x38] sm:$0xff] (!%p239_p2)  ;;  %v688_v29 = vld [vmem:[%s2183_s3 + $0x40] sm:$0xff] (!%p239_p2)  ;;  %v689_v30 = vld [vmem:[%s2183_s3 + $0x48] sm:$0xff] (!%p239_p2) }
   0x9   : > { %1684 = vmatprep.subr.bf16.mxu1 (!%p239_p2), %v1683_v3  ;;  %v1695_v28 = vpack.c.bf16 (!%p239_p2), %v687_v23, %v686_v22  ;;  %v1699_v35 = vpack.c.bf16 (!%p239_p2), %v689_v30, %v688_v29  ;;  %v690_v36 = vld [vmem:[%s2183_s3 + $0x50] sm:$0xff] (!%p239_p2)  ;;  %v691_v37 = vld [vmem:[%s2183_s3 + $0x58] sm:$0xff] (!%p239_p2)  ;;  %v692_v43 = vld [vmem:[%s2183_s3 + $0x60] sm:$0xff] (!%p239_p2) }
   0xa   : > { %v1703_v42 = vpack.c.bf16 (!%p239_p2), %v691_v37, %v690_v36  ;;  %v693_v44 = vld [vmem:[%s2183_s3 + $0x68] sm:$0xff] (!%p239_p2)  ;;  %v694_v54 = vld [vmem:[%s2183_s3 + $0x70] sm:$0xff] (!%p239_p2)  ;;  %v695_v55 = vld [vmem:[%s2183_s3 + $0x78] sm:$0xff] (!%p239_p2) }
   0xb   : > { %v1707_v49 = vpack.c.bf16 (!%p239_p2), %v693_v44, %v692_v43  ;;  %v1711_v56 = vpack.c.bf16 (!%p239_p2), %v695_v55, %v694_v54  ;;  %v960_v57 = vld [vmem:[%s2185_s5] sm:$0xff] (!%p239_p2)  ;;  %v961_v58 = vld [vmem:[%s2185_s5 + $0x8] sm:$0xff] (!%p239_p2)  ;;  %v962_v59 = vld [vmem:[%s2185_s5 + $0x10] sm:$0xff] (!%p239_p2) }
   0xc   : > { %v1715_v60 = vpack.c.bf16 (!%p239_p2), %v961_v58, %v960_v57  ;;  %v963_v61 = vld [vmem:[%s2185_s5 + $0x18] sm:$0xff] (!%p239_p2)  ;;  %v964_v63 = vld [vmem:[%s2185_s5 + $0x20] sm:$0xff] (!%p239_p2)  ;;  %v965_v0 = vld [vmem:[%s2185_s5 + $0x28] sm:$0xff] (!%p239_p2) }
   0xd   : > { %s2189_s28 = smov (!%p271_p3, %s1302_s28), 63  ;;  %v1719_v62 = vpack.c.bf16 %v963_v61, %v962_v59  ;;  %v1723_v1 = vpack.c.bf16 %v965_v0, %v964_v63  ;;  %v966_v2 = vld [vmem:[%s2185_s5 + $0x30] sm:$0xff] }
   0xe   : > { %s1303_s10 = sshll.u32 %s2189_s28, 3  ;;  %1716 = vmatprep.subr.bf16.mxu0 %v1715_v60  ;;  %v970_v8 = vld [vmem:[%s2185_s5 + $0x50] sm:$0xff] }
   0xf   : > { %s1830_s13 = scalar_lea.vmem %s2180_s0, %s1303_s10  ;;  %s2079_s23 = scalar_lea.vmem %s2187_s7, %s1303_s10 }
  0x10   : > { %v282_v4 = vld [vmem:[%s1830_s13] sm:$0xff]  ;;  %v283_v5 = vld [vmem:[%s1830_s13 + $0x8] sm:$0xff]  ;;  %v284_v6 = vld [vmem:[%s1830_s13 + $0x10] sm:$0xff] }
  0x11   : > { %1475 = vmatprep.mubr.msk.f32.mxu0 %vm322_vm1, %v282_v4  ;;  %v285_v9 = vld [vmem:[%s1830_s13 + $0x18] sm:$0xff]  ;;  %v286_v10 = vld [vmem:[%s1830_s13 + $0x20] sm:$0xff]  ;;  %v299_v12 = vld [vmem:[%s1830_s13 + $0x88] sm:$0xff] }
  0x12   : > { %1476 = vmatmul.mubr.msk.f32.vlgmr.msra.gmra.mrb[0].mxu0 %vm322_vm1, %v283_v5  ;;  %v298_v11 = vld [vmem:[%s1830_s13 + $0x80] sm:$0xff]  ;;  %v300_v14 = vld [vmem:[%s1830_s13 + $0x90] sm:$0xff]  ;;  %v287_v17 = vld [vmem:[%s1830_s13 + $0x28] sm:$0xff] }
  0x13   : > { %1478 = vmatprep.mubr.msk.f32.mxu0 %vm322_vm1, %v284_v6  ;;  %1499 = vmatprep.mubr.msk.f32.mxu1 %vm322_vm1, %v298_v11  ;;  %v288_v18 = vld [vmem:[%s1830_s13 + $0x30] sm:$0xff]  ;;  %v301_v19 = vld [vmem:[%s1830_s13 + $0x98] sm:$0xff]  ;;  %v302_v20 = vld [vmem:[%s1830_s13 + $0xa0] sm:$0xff] }
  0x14   : > { %1500 = vmatmul.mubr.msk.f32.vlgmr.msra.gmra.mrb[0].mxu1 %vm322_vm1, %v299_v12  ;;  %v289_v24 = vld [vmem:[%s1830_s13 + $0x38] sm:$0xff]  ;;  %v290_v25 = vld [vmem:[%s1830_s13 + $0x40] sm:$0xff]  ;;  %v303_v26 = vld [vmem:[%s1830_s13 + $0xa8] sm:$0xff]  ;;  %1718 = vmatpush3.bf16.msra.mxu0 %v1715_v60 }
  0x15   : > { %1502 = vmatprep.mubr.msk.f32.mxu1 %vm322_vm1, %v300_v14  ;;  %1686 = vmatpush3.bf16.msra.mxu1 %v1683_v3  ;;  %v304_v27 = vld [vmem:[%s1830_s13 + $0xb0] sm:$0xff]  ;;  %v291_v31 = vld [vmem:[%s1830_s13 + $0x48] sm:$0xff]  ;;  %v305_v33 = vld [vmem:[%s1830_s13 + $0xb8] sm:$0xff] }
  0x16   : > { %1479 = vmatmul.mubr.msk.f32.gmra.mrb[2].mxu0 %vm322_vm1, %v285_v9  ;;  %1688 = vmatprep.subr.bf16.mxu1 %v1687_v13  ;;  %v292_v32 = vld [vmem:[%s1830_s13 + $0x50] sm:$0xff]  ;;  %v306_v34 = vld [vmem:[%s1830_s13 + $0xc0] sm:$0xff]  ;;  %v293_v38 = vld [vmem:[%s1830_s13 + $0x58] sm:$0xff] }
  0x17   : > { %1481 = vmatprep.mubr.msk.f32.mxu0 %vm322_vm1, %v286_v10  ;;  %v294_v39 = vld [vmem:[%s1830_s13 + $0x60] sm:$0xff]  ;;  %v307_v40 = vld [vmem:[%s1830_s13 + $0xc8] sm:$0xff]  ;;  %v308_v41 = vld [vmem:[%s1830_s13 + $0xd0] sm:$0xff]  ;;  %1720 = vmatprep.subr.bf16.mxu0 %v1719_v62 }
  0x18   : > { %1503 = vmatmul.mubr.msk.f32.gmra.mrb[2].mxu1 %vm322_vm1, %v301_v19  ;;  %v295_v45 = vld [vmem:[%s1830_s13 + $0x68] sm:$0xff]  ;;  %v296_v46 = vld [vmem:[%s1830_s13 + $0x70] sm:$0xff]  ;;  %v309_v47 = vld [vmem:[%s1830_s13 + $0xd8] sm:$0xff]  ;;  %1722 = vmatpush3.bf16.msra.mxu0 %v1719_v62 }
  0x19   : > { %1505 = vmatprep.mubr.msk.f32.mxu1 %vm322_vm1, %v302_v20  ;;  %1690 = vmatpush3.bf16.msra.mxu1 %v1687_v13  ;;  %v310_v48 = vld [vmem:[%s1830_s13 + $0xe0] sm:$0xff]  ;;  %v297_v50 = vld [vmem:[%s1830_s13 + $0x78] sm:$0xff]  ;;  %v311_v51 = vld [vmem:[%s1830_s13 + $0xe8] sm:$0xff] }
  0x1a   : > { %1482 = vmatmul.mubr.msk.f32.gmra.mrb[4].mxu0 %vm322_vm1, %v287_v17  ;;  %1692 = vmatprep.subr.bf16.mxu1 %v1691_v21  ;;  %v312_v52 = vld [vmem:[%s1830_s13 + $0xf0] sm:$0xff]  ;;  %v313_v53 = vld [vmem:[%s1830_s13 + $0xf8] sm:$0xff]  ;;  %v968_v5 = vld [vmem:[%s2185_s5 + $0x40] sm:$0xff] }
  0x1b   : > { %1484 = vmatprep.mubr.msk.f32.mxu0 %vm322_vm1, %v288_v18  ;;  %v967_v3 = vld [vmem:[%s2185_s5 + $0x38] sm:$0xff]  ;;  %1724 = vmatprep.subr.bf16.mxu0 %v1723_v1  ;;  %v969_v6 = vld [vmem:[%s2185_s5 + $0x48] sm:$0xff]  ;;  %v972_v11 = vld [vmem:[%s2185_s5 + $0x60] sm:$0xff] }
  0x1c   : > { %1506 = vmatmul.mubr.msk.f32.gmra.mrb[4].mxu1 %vm322_vm1, %v303_v26  ;;  %v1727_v4 = vpack.c.bf16 %v967_v3, %v966_v2  ;;  %1726 = vmatpush3.bf16.msra.mxu0 %v1723_v1  ;;  %v1731_v7 = vpack.c.bf16 %v969_v6, %v968_v5  ;;  %v971_v9 = vld [vmem:[%s2185_s5 + $0x58] sm:$0xff]  ;;  %v973_v12 = vld [vmem:[%s2185_s5 + $0x68] sm:$0xff]  ;;  %v1983_v14 = vld [vmem:[%s2182_s2] ss:$0 sm:$0xff] }
  0x1d   : > { %1508 = vmatprep.mubr.msk.f32.mxu1 %vm322_vm1, %v304_v27  ;;  %1694 = vmatpush3.bf16.msra.mxu1 %v1691_v21  ;;  %v1735_v10 = vpack.c.bf16 %v971_v9, %v970_v8  ;;  %v1739_v13 = vpack.c.bf16 %v973_v12, %v972_v11 }
  0x1e   : > { %1485 = vmatmul.mubr.msk.f32.gmra.mrb[6].mxu0 %vm322_vm1, %v289_v24  ;;  %1696 = vmatprep.subr.bf16.mxu1 %v1695_v28 }
  0x1f   : > { %1487 = vmatprep.mubr.msk.f32.mxu0 %vm322_vm1, %v290_v25  ;;  %1728 = vmatprep.subr.bf16.mxu0 %v1727_v4 }
  0x20   : > { %1509 = vmatmul.mubr.msk.f32.gmra.mrb[6].mxu1 %vm322_vm1, %v305_v33  ;;  %1730 = vmatpush3.bf16.msra.mxu0 %v1727_v4 }
  0x21   : > { %1511 = vmatprep.mubr.msk.f32.mxu1 %vm322_vm1, %v306_v34  ;;  %1698 = vmatpush3.bf16.msra.mxu1 %v1695_v28 }
  0x22   : > { %1488 = vmatmul.mubr.msk.f32.gmra.mrb[8].mxu0 %vm322_vm1, %v291_v31  ;;  %1700 = vmatprep.subr.bf16.mxu1 %v1699_v35 }
  0x23   : > { %1490 = vmatprep.mubr.msk.f32.mxu0 %vm322_vm1, %v292_v32  ;;  %1732 = vmatprep.subr.bf16.mxu0 %v1731_v7 }
  0x24   : > { %1512 = vmatmul.mubr.msk.f32.gmra.mrb[8].mxu1 %vm322_vm1, %v307_v40  ;;  %1734 = vmatpush3.bf16.msra.mxu0 %v1731_v7 }
  0x25   : > { %1514 = vmatprep.mubr.msk.f32.mxu1 %vm322_vm1, %v308_v41  ;;  %1702 = vmatpush3.bf16.msra.mxu1 %v1699_v35 }
  0x26   : > { %1491 = vmatmul.mubr.msk.f32.gmra.mrb[10].mxu0 %vm322_vm1, %v293_v38  ;;  %1704 = vmatprep.subr.bf16.mxu1 %v1703_v42 }
  0x27   : > { %1493 = vmatprep.mubr.msk.f32.mxu0 %vm322_vm1, %v294_v39  ;;  %1736 = vmatprep.subr.bf16.mxu0 %v1735_v10 }
  0x28   : > { %1515 = vmatmul.mubr.msk.f32.gmra.mrb[10].mxu1 %vm322_vm1, %v309_v47  ;;  %1738 = vmatpush3.bf16.msra.mxu0 %v1735_v10 }
  0x29   : > { %1517 = vmatprep.mubr.msk.f32.mxu1 %vm322_vm1, %v310_v48  ;;  %1706 = vmatpush3.bf16.msra.mxu1 %v1703_v42 }
  0x2a   : > { %1494 = vmatmul.mubr.msk.f32.gmra.mrb[12].mxu0 %vm322_vm1, %v295_v45  ;;  %1708 = vmatprep.subr.bf16.mxu1 %v1707_v49 }
  0x2b   : > { %1496 = vmatprep.mubr.msk.f32.mxu0 %vm322_vm1, %v296_v46  ;;  %1740 = vmatprep.subr.bf16.mxu0 %v1739_v13 }
  0x2c   : > { %1518 = vmatmul.mubr.msk.f32.gmra.mrb[12].mxu1 %vm322_vm1, %v311_v51  ;;  %1742 = vmatpush3.bf16.msra.mxu0 %v1739_v13 }
  0x2d   : > { %1520 = vmatprep.mubr.msk.f32.mxu1 %vm322_vm1, %v312_v52  ;;  %1710 = vmatpush3.bf16.msra.mxu1 %v1707_v49 }
  0x2e   : > { %1497 = vmatmul.mubr.msk.f32.gmra.mrb[14].mxu0 %vm322_vm1, %v297_v50  ;;  %1712 = vmatprep.subr.bf16.mxu1 %v1711_v56 }
  0x30   : > { %1521 = vmatmul.mubr.msk.f32.gmra.mrb[14].mxu1 %vm322_vm1, %v313_v53 }
  0x31   : > { %1714 = vmatpush3.bf16.msra.mxu1 %v1711_v56 }
  0xe5   : > { %v1477_v15 = vpop.f32.mrb[0].mxu0 }
  0xe6   : > { %v495_v16 = vadd.f32 %v1477_v15, %v1983_v14  ;;  %v489_v17 = vpop.f32.mrb[1].mxu0 }
  0xe7   : > { %v490_v18 = vadd.f32 %v1983_v14, %v489_v17  ;;  %v1988_v24 = vpop.f32.mrb[0].mxu1 }
  0xe8   : > { %v649_v21 = vmax.f32 %v495_v16, 0.0  ;;  %v569_v26 = vpop.f32.mrb[1].mxu1  ;;  %v575_v17 = vadd.f32 %v1988_v24, %v1983_v14 }
  0xe9   : > { %v648_v19 = vmax.f32 %v490_v18, 0.0  ;;  %v1480_v20 = vpop.f32.mrb[2].mxu0  ;;  %v570_v5 = vadd.f32 %v1983_v14, %v569_v26 }
  0xea   : > { %v505_v22 = vadd.f32 %v1480_v20, %v1983_v14  ;;  %v499_v23 = vpop.f32.mrb[3].mxu0 }
  0xeb   : > { %v500_v25 = vadd.f32 %v1983_v14, %v499_v23  ;;  %1555 = vmatprep.mubr.f32.mxu1 %v648_v19  ;;  %v1992_v32 = vpop.f32.mrb[2].mxu1  ;;  %v664_v13 = vmax.f32 %v570_v5, 0.0 }
  0xec   : > { %1556 = vmatmul.mubr.f32.vlgmr.msra.gmra.mrb[16].mxu1 %v649_v21  ;;  %v651_v29 = vmax.f32 %v505_v22, 0.0  ;;  %v579_v34 = vpop.f32.mrb[3].mxu1  ;;  %v665_v22 = vmax.f32 %v575_v17, 0.0  ;;  %v585_v23 = vadd.f32 %v1992_v32, %v1983_v14 }
  0xed   : > { %v650_v27 = vmax.f32 %v500_v25, 0.0  ;;  %v1483_v28 = vpop.f32.mrb[4].mxu0  ;;  %v580_v15 = vadd.f32 %v1983_v14, %v579_v34 }
  0xee   : > { %v515_v30 = vadd.f32 %v1483_v28, %v1983_v14  ;;  %v509_v31 = vpop.f32.mrb[5].mxu0 }
  0xef   : > { %v510_v33 = vadd.f32 %v1983_v14, %v509_v31  ;;  %1558 = vmatprep.mubr.f32.mxu1 %v650_v27  ;;  %v1996_v40 = vpop.f32.mrb[4].mxu1  ;;  %v666_v20 = vmax.f32 %v580_v15, 0.0  ;;  %v667_v27 = vmax.f32 %v585_v23, 0.0 }
  0xf0   : > { %1559 = vmatmul.mubr.f32.gmra.mrb[18].mxu1 %v651_v29  ;;  %v653_v37 = vmax.f32 %v515_v30, 0.0  ;;  %v589_v42 = vpop.f32.mrb[5].mxu1  ;;  %v595_v24 = vadd.f32 %v1996_v40, %v1983_v14 }
  0xf1   : > { %v652_v35 = vmax.f32 %v510_v33, 0.0  ;;  %v1486_v36 = vpop.f32.mrb[6].mxu0  ;;  %v590_v21 = vadd.f32 %v1983_v14, %v589_v42 }
  0xf2   : > { %v525_v38 = vadd.f32 %v1486_v36, %v1983_v14  ;;  %v519_v39 = vpop.f32.mrb[7].mxu0  ;;  %v669_v30 = vmax.f32 %v595_v24, 0.0 }
  0xf3   : > { %v520_v41 = vadd.f32 %v1983_v14, %v519_v39  ;;  %1561 = vmatprep.mubr.f32.mxu1 %v652_v35  ;;  %v1510_v48 = vpop.f32.mrb[6].mxu1  ;;  %v668_v25 = vmax.f32 %v590_v21, 0.0 }
  0xf4   : > { %1562 = vmatmul.mubr.f32.gmra.mrb[20].mxu1 %v653_v37  ;;  %v655_v45 = vmax.f32 %v525_v38, 0.0  ;;  %v599_v50 = vpop.f32.mrb[7].mxu1  ;;  %v605_v31 = vadd.f32 %v1510_v48, %v1983_v14  ;;  %v974_v48 = vld [vmem:[%s2185_s5 + $0x70] sm:$0xff] }
  0xf5   : > { %v654_v43 = vmax.f32 %v520_v41, 0.0  ;;  %v1489_v44 = vpop.f32.mrb[8].mxu0  ;;  %v600_v26 = vadd.f32 %v1983_v14, %v599_v50 }
  0xf6   : > { %v535_v46 = vadd.f32 %v1489_v44, %v1983_v14  ;;  %v529_v47 = vpop.f32.mrb[9].mxu0  ;;  %v671_v34 = vmax.f32 %v605_v31, 0.0 }
  0xf7   : > { %v530_v49 = vadd.f32 %v1983_v14, %v529_v47  ;;  %1564 = vmatprep.mubr.f32.mxu1 %v654_v43  ;;  %v1513_v56 = vpop.f32.mrb[8].mxu1  ;;  %v670_v28 = vmax.f32 %v600_v26, 0.0 }
  0xf8   : > { %1565 = vmatmul.mubr.f32.gmra.mrb[22].mxu1 %v655_v45  ;;  %v657_v53 = vmax.f32 %v535_v46, 0.0  ;;  %v609_v58 = vpop.f32.mrb[9].mxu1  ;;  %v615_v35 = vadd.f32 %v1513_v56, %v1983_v14 }
  0xf9   : > { %v656_v51 = vmax.f32 %v530_v49, 0.0  ;;  %v1492_v52 = vpop.f32.mrb[10].mxu0  ;;  %v610_v29 = vadd.f32 %v1983_v14, %v609_v58  ;;  %v975_v49 = vld [vmem:[%s2185_s5 + $0x78] sm:$0xff] }
  0xfa   : > { %v545_v54 = vadd.f32 %v1492_v52, %v1983_v14  ;;  %v539_v55 = vpop.f32.mrb[11].mxu0  ;;  %v673_v38 = vmax.f32 %v615_v35, 0.0  ;;  %v1743_v50 = vpack.c.bf16 %v975_v49, %v974_v48 }
  0xfb   : > { %v540_v57 = vadd.f32 %v1983_v14, %v539_v55  ;;  %1567 = vmatprep.mubr.f32.mxu1 %v656_v51  ;;  %v1516_v0 = vpop.f32.mrb[10].mxu1  ;;  %v672_v33 = vmax.f32 %v610_v29, 0.0  ;;  %v2035_v51 = vld [vmem:[%s2184_s4] ss:$0 sm:$0xff] }
  0xfc   : > { %1568 = vmatmul.mubr.f32.gmra.mrb[24].mxu1 %v657_v53  ;;  %v659_v61 = vmax.f32 %v545_v54, 0.0  ;;  %v619_v2 = vpop.f32.mrb[11].mxu1  ;;  %v625_v39 = vadd.f32 %v1516_v0, %v1983_v14  ;;  %1744 = vmatprep.subr.bf16.mxu0 %v1743_v50 }
  0xfd   : > { %v658_v59 = vmax.f32 %v540_v57, 0.0  ;;  %v1495_v60 = vpop.f32.mrb[12].mxu0  ;;  %v620_v32 = vadd.f32 %v1983_v14, %v619_v2  ;;  %1746 = vmatpush3.bf16.msra.mxu0 %v1743_v50 }
  0xfe   : > { %v555_v62 = vadd.f32 %v1495_v60, %v1983_v14  ;;  %v549_v63 = vpop.f32.mrb[13].mxu0  ;;  %v675_v42 = vmax.f32 %v625_v39, 0.0 }
  0xff   : > { %v550_v1 = vadd.f32 %v1983_v14, %v549_v63  ;;  %1570 = vmatprep.mubr.f32.mxu1 %v658_v59  ;;  %v1519_v9 = vpop.f32.mrb[12].mxu1  ;;  %v674_v36 = vmax.f32 %v620_v32, 0.0 }
 0x100   : > { %1571 = vmatmul.mubr.f32.gmra.mrb[26].mxu1 %v659_v61  ;;  %v661_v6 = vmax.f32 %v555_v62, 0.0  ;;  %v629_v11 = vpop.f32.mrb[13].mxu1  ;;  %v635_v43 = vadd.f32 %v1519_v9, %v1983_v14 }
 0x101   : > { %v660_v3 = vmax.f32 %v550_v1, 0.0  ;;  %v1498_v4 = vpop.f32.mrb[14].mxu0  ;;  %v630_v37 = vadd.f32 %v1983_v14, %v629_v11 }
 0x102   : > { %v565_v7 = vadd.f32 %v1498_v4, %v1983_v14  ;;  %v559_v8 = vpop.f32.mrb[15].mxu0  ;;  %v677_v45 = vmax.f32 %v635_v43, 0.0 }
 0x103   : > { %v560_v10 = vadd.f32 %v1983_v14, %v559_v8  ;;  %1573 = vmatprep.mubr.f32.mxu1 %v660_v3  ;;  %v1522_v18 = vpop.f32.mrb[14].mxu1  ;;  %v676_v40 = vmax.f32 %v630_v37, 0.0 }
 0x104   : > { %1574 = vmatmul.mubr.f32.gmra.mrb[28].mxu1 %v661_v6  ;;  %v663_v16 = vmax.f32 %v565_v7, 0.0  ;;  %v639_v19 = vpop.f32.mrb[15].mxu1  ;;  %v645_v46 = vadd.f32 %v1522_v18, %v1983_v14 }
 0x105   : > { %v662_v12 = vmax.f32 %v560_v10, 0.0  ;;  %v640_v41 = vadd.f32 %v1983_v14, %v639_v19 }
 0x106   : > { %v679_v47 = vmax.f32 %v645_v46, 0.0 }
 0x107   : > { %1576 = vmatprep.mubr.f32.mxu1 %v662_v12  ;;  %v678_v44 = vmax.f32 %v640_v41, 0.0 }
 0x108   : > { %1577 = vmatmul.mubr.f32.gmra.mrb[30].mxu1 %v663_v16 }
 0x109   : > { %1579 = vmatprep.mubr.f32.mxu1 %v664_v13 }
 0x10c   : > { %1580 = vmatmul.mubr.f32.gmra.mrb[32].mxu1 %v665_v22 }
 0x10d   : > { %1582 = vmatprep.mubr.f32.mxu1 %v666_v20 }
 0x110   : > { %1583 = vmatmul.mubr.f32.gmra.mrb[34].mxu1 %v667_v27 }
 0x111   : > { %1585 = vmatprep.mubr.f32.mxu1 %v668_v25 }
 0x114   : > { %1586 = vmatmul.mubr.f32.gmra.mrb[36].mxu1 %v669_v30 }
 0x115   : > { %1588 = vmatprep.mubr.f32.mxu1 %v670_v28 }
 0x118   : > { %1589 = vmatmul.mubr.f32.gmra.mrb[38].mxu1 %v671_v34 }
 0x119   : > { %1591 = vmatprep.mubr.f32.mxu1 %v672_v33 }
 0x11c   : > { %1592 = vmatmul.mubr.f32.gmra.mrb[40].mxu1 %v673_v38 }
 0x11d   : > { %1594 = vmatprep.mubr.f32.mxu1 %v674_v36 }
 0x120   : > { %1595 = vmatmul.mubr.f32.gmra.mrb[42].mxu1 %v675_v42 }
 0x121   : > { %1597 = vmatprep.mubr.f32.mxu1 %v676_v40 }
 0x124   : > { %1598 = vmatmul.mubr.f32.gmra.mrb[44].mxu1 %v677_v45 }
 0x125   : > { %1600 = vmatprep.mubr.f32.mxu1 %v678_v44 }
 0x128   : > { %1601 = vmatmul.mubr.f32.gmra.mrb[46].mxu1 %v679_v47 }
 0x1bf   : > { %v1557_v14 = vpop.f32.mrb[16].mxu1 }
 0x1c0   : > { %v775_v52 = vadd.f32 %v1557_v14, %v2035_v51  ;;  %v769_v53 = vpop.f32.mrb[17].mxu1 }
 0x1c1   : > { %v770_v54 = vadd.f32 %v2035_v51, %v769_v53 }
 0x1c2   : > { %v929_v57 = vmax.f32 %v775_v52, 0.0 }
 0x1c3   : > { %v928_v55 = vmax.f32 %v770_v54, 0.0  ;;  %v1560_v56 = vpop.f32.mrb[18].mxu1 }
 0x1c4   : > { %v785_v58 = vadd.f32 %v1560_v56, %v2035_v51  ;;  %v779_v59 = vpop.f32.mrb[19].mxu1 }
 0x1c5   : > { %v780_v60 = vadd.f32 %v2035_v51, %v779_v59  ;;  %1635 = vmatprep.mubr.f32.mxu0 %v928_v55 }
 0x1c6   : > { %1636 = vmatmul.mubr.f32.vlgmr.msra.gmra.mrb[16].mxu0 %v929_v57  ;;  %v931_v63 = vmax.f32 %v785_v58, 0.0 }
 0x1c7   : > { %v930_v61 = vmax.f32 %v780_v60, 0.0  ;;  %v1563_v62 = vpop.f32.mrb[20].mxu1 }
 0x1c8   : > { %v795_v0 = vadd.f32 %v1563_v62, %v2035_v51  ;;  %v789_v1 = vpop.f32.mrb[21].mxu1 }
 0x1c9   : > { %v790_v2 = vadd.f32 %v2035_v51, %v789_v1  ;;  %1638 = vmatprep.mubr.f32.mxu0 %v930_v61 }
 0x1ca   : > { %1639 = vmatmul.mubr.f32.gmra.mrb[18].mxu0 %v931_v63  ;;  %v933_v5 = vmax.f32 %v795_v0, 0.0 }
 0x1cb   : > { %v932_v3 = vmax.f32 %v790_v2, 0.0  ;;  %v1566_v4 = vpop.f32.mrb[22].mxu1 }
 0x1cc   : > { %v805_v6 = vadd.f32 %v1566_v4, %v2035_v51  ;;  %v799_v7 = vpop.f32.mrb[23].mxu1 }
 0x1cd   : > { %v800_v8 = vadd.f32 %v2035_v51, %v799_v7  ;;  %1641 = vmatprep.mubr.f32.mxu0 %v932_v3 }
 0x1ce   : > { %1642 = vmatmul.mubr.f32.gmra.mrb[20].mxu0 %v933_v5  ;;  %v935_v11 = vmax.f32 %v805_v6, 0.0 }
 0x1cf   : > { %v934_v9 = vmax.f32 %v800_v8, 0.0  ;;  %v1569_v10 = vpop.f32.mrb[24].mxu1 }
 0x1d0   : > { %v815_v12 = vadd.f32 %v1569_v10, %v2035_v51  ;;  %v809_v13 = vpop.f32.mrb[25].mxu1 }
 0x1d1   : > { %v810_v15 = vadd.f32 %v2035_v51, %v809_v13  ;;  %1644 = vmatprep.mubr.f32.mxu0 %v934_v9 }
 0x1d2   : > { %1645 = vmatmul.mubr.f32.gmra.mrb[22].mxu0 %v935_v11  ;;  %v937_v18 = vmax.f32 %v815_v12, 0.0 }
 0x1d3   : > { %v936_v16 = vmax.f32 %v810_v15, 0.0  ;;  %v1572_v17 = vpop.f32.mrb[26].mxu1 }
 0x1d4   : > { %v825_v19 = vadd.f32 %v1572_v17, %v2035_v51  ;;  %v819_v20 = vpop.f32.mrb[27].mxu1 }
 0x1d5   : > { %v820_v21 = vadd.f32 %v2035_v51, %v819_v20  ;;  %1647 = vmatprep.mubr.f32.mxu0 %v936_v16 }
 0x1d6   : > { %1648 = vmatmul.mubr.f32.gmra.mrb[24].mxu0 %v937_v18  ;;  %v939_v25 = vmax.f32 %v825_v19, 0.0 }
 0x1d7   : > { %v938_v22 = vmax.f32 %v820_v21, 0.0  ;;  %v1575_v23 = vpop.f32.mrb[28].mxu1  ;;  %v2072_v21 = vld [vmem:[%s2186_s6] ss:$0 sm:$0xff] }
 0x1d8   : > { %v835_v26 = vadd.f32 %v1575_v23, %v2035_v51  ;;  %v829_v27 = vpop.f32.mrb[29].mxu1 }
 0x1d9   : > { %v830_v24 = vadd.f32 %v2035_v51, %v829_v27  ;;  %1650 = vmatprep.mubr.f32.mxu0 %v938_v22 }
 0x1da   : > { %1651 = vmatmul.mubr.f32.gmra.mrb[26].mxu0 %v939_v25  ;;  %v941_v30 = vmax.f32 %v835_v26, 0.0 }
 0x1db   : > { %v940_v28 = vmax.f32 %v830_v24, 0.0  ;;  %v1578_v29 = vpop.f32.mrb[30].mxu1 }
 0x1dc   : > { %v845_v31 = vadd.f32 %v1578_v29, %v2035_v51  ;;  %v839_v33 = vpop.f32.mrb[31].mxu1 }
 0x1dd   : > { %v840_v32 = vadd.f32 %v2035_v51, %v839_v33  ;;  %1653 = vmatprep.mubr.f32.mxu0 %v940_v28 }
 0x1de   : > { %1654 = vmatmul.mubr.f32.gmra.mrb[28].mxu0 %v941_v30  ;;  %v943_v36 = vmax.f32 %v845_v31, 0.0 }
 0x1df   : > { %v942_v34 = vmax.f32 %v840_v32, 0.0  ;;  %v1581_v35 = vpop.f32.mrb[32].mxu1 }
 0x1e0   : > { %v855_v37 = vadd.f32 %v1581_v35, %v2035_v51  ;;  %v849_v38 = vpop.f32.mrb[33].mxu1 }
 0x1e1   : > { %v850_v39 = vadd.f32 %v2035_v51, %v849_v38  ;;  %1656 = vmatprep.mubr.f32.mxu0 %v942_v34 }
 0x1e2   : > { %1657 = vmatmul.mubr.f32.gmra.mrb[30].mxu0 %v943_v36  ;;  %v945_v42 = vmax.f32 %v855_v37, 0.0 }
 0x1e3   : > { %v944_v40 = vmax.f32 %v850_v39, 0.0  ;;  %v1584_v41 = vpop.f32.mrb[34].mxu1 }
 0x1e4   : > { %v865_v43 = vadd.f32 %v1584_v41, %v2035_v51  ;;  %v859_v44 = vpop.f32.mrb[35].mxu1 }
 0x1e5   : > { %v860_v45 = vadd.f32 %v2035_v51, %v859_v44  ;;  %1659 = vmatprep.mubr.f32.mxu0 %v944_v40 }
 0x1e6   : > { %1660 = vmatmul.mubr.f32.gmra.mrb[32].mxu0 %v945_v42  ;;  %v947_v48 = vmax.f32 %v865_v43, 0.0 }
 0x1e7   : > { %v946_v46 = vmax.f32 %v860_v45, 0.0  ;;  %v1587_v47 = vpop.f32.mrb[36].mxu1 }
 0x1e8   : > { %v875_v49 = vadd.f32 %v1587_v47, %v2035_v51  ;;  %v869_v50 = vpop.f32.mrb[37].mxu1 }
 0x1e9   : > { %v870_v14 = vadd.f32 %v2035_v51, %v869_v50  ;;  %1662 = vmatprep.mubr.f32.mxu0 %v946_v46 }
 0x1ea   : > { %1663 = vmatmul.mubr.f32.gmra.mrb[34].mxu0 %v947_v48  ;;  %v949_v54 = vmax.f32 %v875_v49, 0.0 }
 0x1eb   : > { %v948_v52 = vmax.f32 %v870_v14, 0.0  ;;  %v1590_v53 = vpop.f32.mrb[38].mxu1 }
 0x1ec   : > { %v885_v55 = vadd.f32 %v1590_v53, %v2035_v51  ;;  %v879_v56 = vpop.f32.mrb[39].mxu1 }
 0x1ed   : > { %v880_v57 = vadd.f32 %v2035_v51, %v879_v56  ;;  %1665 = vmatprep.mubr.f32.mxu0 %v948_v52 }
 0x1ee   : > { %1666 = vmatmul.mubr.f32.gmra.mrb[36].mxu0 %v949_v54  ;;  %v951_v60 = vmax.f32 %v885_v55, 0.0 }
 0x1ef   : > { %v950_v58 = vmax.f32 %v880_v57, 0.0  ;;  %v1593_v59 = vpop.f32.mrb[40].mxu1 }
 0x1f0   : > { %v895_v61 = vadd.f32 %v1593_v59, %v2035_v51  ;;  %v889_v62 = vpop.f32.mrb[41].mxu1 }
 0x1f1   : > { %v890_v63 = vadd.f32 %v2035_v51, %v889_v62  ;;  %1668 = vmatprep.mubr.f32.mxu0 %v950_v58 }
 0x1f2   : > { %1669 = vmatmul.mubr.f32.gmra.mrb[38].mxu0 %v951_v60  ;;  %v953_v2 = vmax.f32 %v895_v61, 0.0 }
 0x1f3   : > { %v952_v0 = vmax.f32 %v890_v63, 0.0  ;;  %v1596_v1 = vpop.f32.mrb[42].mxu1 }
 0x1f4   : > { %v905_v3 = vadd.f32 %v1596_v1, %v2035_v51  ;;  %v899_v4 = vpop.f32.mrb[43].mxu1 }
 0x1f5   : > { %v900_v5 = vadd.f32 %v2035_v51, %v899_v4  ;;  %1671 = vmatprep.mubr.f32.mxu0 %v952_v0 }
 0x1f6   : > { %1672 = vmatmul.mubr.f32.gmra.mrb[40].mxu0 %v953_v2  ;;  %v955_v8 = vmax.f32 %v905_v3, 0.0 }
 0x1f7   : > { %v954_v6 = vmax.f32 %v900_v5, 0.0  ;;  %v1599_v7 = vpop.f32.mrb[44].mxu1 }
 0x1f8   : > { %v915_v9 = vadd.f32 %v1599_v7, %v2035_v51  ;;  %v909_v10 = vpop.f32.mrb[45].mxu1 }
 0x1f9   : > { %v910_v11 = vadd.f32 %v2035_v51, %v909_v10  ;;  %1674 = vmatprep.mubr.f32.mxu0 %v954_v6 }
 0x1fa   : > { %1675 = vmatmul.mubr.f32.gmra.mrb[42].mxu0 %v955_v8  ;;  %v957_v15 = vmax.f32 %v915_v9, 0.0 }
 0x1fb   : > { %v956_v12 = vmax.f32 %v910_v11, 0.0  ;;  %v1602_v13 = vpop.f32.mrb[46].mxu1 }
 0x1fc   : > { %v925_v16 = vadd.f32 %v1602_v13, %v2035_v51  ;;  %v919_v17 = vpop.f32.mrb[47].mxu1 }
 0x1fd   : > { %v920_v18 = vadd.f32 %v2035_v51, %v919_v17  ;;  %1677 = vmatprep.mubr.f32.mxu0 %v956_v12 }
 0x1fe   : > { %1678 = vmatmul.mubr.f32.gmra.mrb[44].mxu0 %v957_v15  ;;  %v959_v20 = vmax.f32 %v925_v16, 0.0 }
 0x1ff   : > { %v958_v19 = vmax.f32 %v920_v18, 0.0 }
 0x201   : > { %1680 = vmatprep.mubr.f32.mxu0 %v958_v19 }
 0x202   : > { %1681 = vmatmul.mubr.f32.gmra.mrb[46].mxu0 %v959_v20 }
 0x299   : > { %v1637_v51 = vpop.f32.mrb[16].mxu0 }
 0x29a   : > { %v1055_v22 = vadd.f32 %v1637_v51, %v2072_v21  ;;  %v1049_v23 = vpop.f32.mrb[17].mxu0 }
 0x29b   : > { %v1050_v25 = vadd.f32 %v2072_v21, %v1049_v23 }
 0x29c   : > { %1210 = vst.msk [vmem:[%s2079_s23 + $0x8] sm:$0xff] %vm1208_vm2, %v1055_v22 }
 0x29d   : > { %1209 = vst.msk [vmem:[%s2079_s23] sm:$0xff] %vm1208_vm2, %v1050_v25  ;;  %v1640_v26 = vpop.f32.mrb[18].mxu0 }
 0x29e   : > { %v1065_v27 = vadd.f32 %v1640_v26, %v2072_v21  ;;  %v1059_v24 = vpop.f32.mrb[19].mxu0 }
 0x29f   : > { %v1060_v28 = vadd.f32 %v2072_v21, %v1059_v24 }
 0x2a0   : > { %1212 = vst.msk [vmem:[%s2079_s23 + $0x18] sm:$0xff] %vm1208_vm2, %v1065_v27 }
 0x2a1   : > { %1211 = vst.msk [vmem:[%s2079_s23 + $0x10] sm:$0xff] %vm1208_vm2, %v1060_v28  ;;  %v1643_v29 = vpop.f32.mrb[20].mxu0 }
 0x2a2   : > { %v1075_v30 = vadd.f32 %v1643_v29, %v2072_v21  ;;  %v1069_v31 = vpop.f32.mrb[21].mxu0 }
 0x2a3   : > { %v1070_v33 = vadd.f32 %v2072_v21, %v1069_v31 }
 0x2a4   : > { %1214 = vst.msk [vmem:[%s2079_s23 + $0x28] sm:$0xff] %vm1208_vm2, %v1075_v30 }
 0x2a5   : > { %1213 = vst.msk [vmem:[%s2079_s23 + $0x20] sm:$0xff] %vm1208_vm2, %v1070_v33  ;;  %v1646_v32 = vpop.f32.mrb[22].mxu0 }
 0x2a6   : > { %v1085_v34 = vadd.f32 %v1646_v32, %v2072_v21  ;;  %v1079_v35 = vpop.f32.mrb[23].mxu0 }
 0x2a7   : > { %v1080_v36 = vadd.f32 %v2072_v21, %v1079_v35 }
 0x2a8   : > { %1216 = vst.msk [vmem:[%s2079_s23 + $0x38] sm:$0xff] %vm1208_vm2, %v1085_v34 }
 0x2a9   : > { %1215 = vst.msk [vmem:[%s2079_s23 + $0x30] sm:$0xff] %vm1208_vm2, %v1080_v36  ;;  %v1649_v37 = vpop.f32.mrb[24].mxu0 }
 0x2aa   : > { %v1095_v38 = vadd.f32 %v1649_v37, %v2072_v21  ;;  %v1089_v39 = vpop.f32.mrb[25].mxu0 }
 0x2ab   : > { %v1090_v40 = vadd.f32 %v2072_v21, %v1089_v39 }
 0x2ac   : > { %1218 = vst.msk [vmem:[%s2079_s23 + $0x48] sm:$0xff] %vm1208_vm2, %v1095_v38 }
 0x2ad   : > { %1217 = vst.msk [vmem:[%s2079_s23 + $0x40] sm:$0xff] %vm1208_vm2, %v1090_v40  ;;  %v1652_v41 = vpop.f32.mrb[26].mxu0 }
 0x2ae   : > { %v1105_v42 = vadd.f32 %v1652_v41, %v2072_v21  ;;  %v1099_v43 = vpop.f32.mrb[27].mxu0 }
 0x2af   : > { %v1100_v44 = vadd.f32 %v2072_v21, %v1099_v43 }
 0x2b0   : > { %1220 = vst.msk [vmem:[%s2079_s23 + $0x58] sm:$0xff] %vm1208_vm2, %v1105_v42 }
 0x2b1   : > { %1219 = vst.msk [vmem:[%s2079_s23 + $0x50] sm:$0xff] %vm1208_vm2, %v1100_v44  ;;  %v1655_v45 = vpop.f32.mrb[28].mxu0 }
 0x2b2   : > { %v1115_v46 = vadd.f32 %v1655_v45, %v2072_v21  ;;  %v1109_v47 = vpop.f32.mrb[29].mxu0 }
 0x2b3   : > { %v1110_v48 = vadd.f32 %v2072_v21, %v1109_v47 }
 0x2b4   : > { %1222 = vst.msk [vmem:[%s2079_s23 + $0x68] sm:$0xff] %vm1208_vm2, %v1115_v46 }
 0x2b5   : > { %1221 = vst.msk [vmem:[%s2079_s23 + $0x60] sm:$0xff] %vm1208_vm2, %v1110_v48  ;;  %v1658_v49 = vpop.f32.mrb[30].mxu0 }
 0x2b6   : > { %v1125_v50 = vadd.f32 %v1658_v49, %v2072_v21  ;;  %v1119_v14 = vpop.f32.mrb[31].mxu0 }
 0x2b7   : > { %v1120_v52 = vadd.f32 %v2072_v21, %v1119_v14 }
 0x2b8   : > { %1224 = vst.msk [vmem:[%s2079_s23 + $0x78] sm:$0xff] %vm1208_vm2, %v1125_v50 }
 0x2b9   : > { %1223 = vst.msk [vmem:[%s2079_s23 + $0x70] sm:$0xff] %vm1208_vm2, %v1120_v52  ;;  %v1661_v53 = vpop.f32.mrb[32].mxu0 }
 0x2ba   : > { %v1135_v54 = vadd.f32 %v1661_v53, %v2072_v21  ;;  %v1129_v55 = vpop.f32.mrb[33].mxu0 }
 0x2bb   : > { %v1130_v56 = vadd.f32 %v2072_v21, %v1129_v55 }
 0x2bc   : > { %1226 = vst.msk [vmem:[%s2079_s23 + $0x88] sm:$0xff] %vm1208_vm2, %v1135_v54 }
 0x2bd   : > { %1225 = vst.msk [vmem:[%s2079_s23 + $0x80] sm:$0xff] %vm1208_vm2, %v1130_v56  ;;  %v1664_v57 = vpop.f32.mrb[34].mxu0 }
 0x2be   : > { %v1145_v58 = vadd.f32 %v1664_v57, %v2072_v21  ;;  %v1139_v59 = vpop.f32.mrb[35].mxu0 }
 0x2bf   : > { %v1140_v60 = vadd.f32 %v2072_v21, %v1139_v59 }
 0x2c0   : > { %1228 = vst.msk [vmem:[%s2079_s23 + $0x98] sm:$0xff] %vm1208_vm2, %v1145_v58 }
 0x2c1   : > { %1227 = vst.msk [vmem:[%s2079_s23 + $0x90] sm:$0xff] %vm1208_vm2, %v1140_v60  ;;  %v1667_v61 = vpop.f32.mrb[36].mxu0 }
 0x2c2   : > { %v1155_v62 = vadd.f32 %v1667_v61, %v2072_v21  ;;  %v1149_v63 = vpop.f32.mrb[37].mxu0 }
 0x2c3   : > { %v1150_v0 = vadd.f32 %v2072_v21, %v1149_v63 }
 0x2c4   : > { %1230 = vst.msk [vmem:[%s2079_s23 + $0xa8] sm:$0xff] %vm1208_vm2, %v1155_v62 }
 0x2c5   : > { %1229 = vst.msk [vmem:[%s2079_s23 + $0xa0] sm:$0xff] %vm1208_vm2, %v1150_v0  ;;  %v1670_v1 = vpop.f32.mrb[38].mxu0 }
 0x2c6   : > { %v1165_v2 = vadd.f32 %v1670_v1, %v2072_v21  ;;  %v1159_v3 = vpop.f32.mrb[39].mxu0 }
 0x2c7   : > { %v1160_v4 = vadd.f32 %v2072_v21, %v1159_v3 }
 0x2c8   : > { %1232 = vst.msk [vmem:[%s2079_s23 + $0xb8] sm:$0xff] %vm1208_vm2, %v1165_v2 }
 0x2c9   : > { %1231 = vst.msk [vmem:[%s2079_s23 + $0xb0] sm:$0xff] %vm1208_vm2, %v1160_v4  ;;  %v1673_v5 = vpop.f32.mrb[40].mxu0 }
 0x2ca   : > { %v1175_v6 = vadd.f32 %v1673_v5, %v2072_v21  ;;  %v1169_v7 = vpop.f32.mrb[41].mxu0 }
 0x2cb   : > { %v1170_v8 = vadd.f32 %v2072_v21, %v1169_v7 }
 0x2cc   : > { %1234 = vst.msk [vmem:[%s2079_s23 + $0xc8] sm:$0xff] %vm1208_vm2, %v1175_v6 }
 0x2cd   : > { %1233 = vst.msk [vmem:[%s2079_s23 + $0xc0] sm:$0xff] %vm1208_vm2, %v1170_v8  ;;  %v1676_v9 = vpop.f32.mrb[42].mxu0 }
 0x2ce   : > { %v1185_v10 = vadd.f32 %v1676_v9, %v2072_v21  ;;  %v1179_v11 = vpop.f32.mrb[43].mxu0 }
 0x2cf   : > { %v1180_v12 = vadd.f32 %v2072_v21, %v1179_v11 }
 0x2d0   : > { %1236 = vst.msk [vmem:[%s2079_s23 + $0xd8] sm:$0xff] %vm1208_vm2, %v1185_v10 }
 0x2d1   : > { %1235 = vst.msk [vmem:[%s2079_s23 + $0xd0] sm:$0xff] %vm1208_vm2, %v1180_v12  ;;  %v1679_v13 = vpop.f32.mrb[44].mxu0 }
 0x2d2   : > { %v1195_v15 = vadd.f32 %v1679_v13, %v2072_v21  ;;  %v1189_v16 = vpop.f32.mrb[45].mxu0 }
 0x2d3   : > { %v1190_v17 = vadd.f32 %v2072_v21, %v1189_v16 }
 0x2d4   : > { %1238 = vst.msk [vmem:[%s2079_s23 + $0xe8] sm:$0xff] %vm1208_vm2, %v1195_v15 }
 0x2d5   : > { %1237 = vst.msk [vmem:[%s2079_s23 + $0xe0] sm:$0xff] %vm1208_vm2, %v1190_v17  ;;  %v1682_v18 = vpop.f32.mrb[46].mxu0 }
 0x2d6   : > { %v1205_v19 = vadd.f32 %v1682_v18, %v2072_v21  ;;  %v1199_v20 = vpop.f32.mrb[47].mxu0 }
 0x2d7   : > { %v1200_v51 = vadd.f32 %v2072_v21, %v1199_v20 }
 0x2d8   : > { %1240 = vst.msk [vmem:[%s2079_s23 + $0xf8] sm:$0xff] %vm1208_vm2, %v1205_v19 }
 0x2d9   : > { %1239 = vst.msk [vmem:[%s2079_s23 + $0xf0] sm:$0xff] %vm1208_vm2, %v1200_v51 }
 0x2da PF: > { %s17_s24 = sadd.s32 1, %s1763_s24  }
 0x2db   : > { %p14_p4 = scmp.ge.s32.totalorder %s17_s24, 4  }
 0x2dd   :  { %16 = sbr.rel (!%p14_p4) target bundleno = 1 (0x1), region = 78 }

</bundles_post_ra>
